<compile_context>
chip_gen: v6e
topology: v6e:2x2x1
jax: 0.10.0
libtpu: 0.0.40
codegen_flags: <defaults>
</compile_context>

<pallas_src>
import functools

import jax
import jax.numpy as jnp
from jax.experimental import pallas as pl
from jax.experimental.pallas import tpu as pltpu


def _round_up(n, m):
    return ((n + m - 1) // m) * m


def _pe_layout(d_in, num_freqs, include_input):
    """Row layout of the kernel's positional-encoding block.

    rows [0, seg_in)              : [x (d_in rows, if include_input) | ones | 0-pad]
    rows [seg_in, seg_in+seg_trig): [sin(2^k x_j) for k, j | 0-pad]
    next seg_trig rows            : [cos(2^k x_j) for k, j | 0-pad]
    """
    n_head = (d_in if include_input else 0) + 1          # +1 for the ones row
    seg_in = _round_up(n_head, 16)
    seg_trig = _round_up(num_freqs * d_in, 16) if num_freqs > 0 else 0
    kp = seg_in + 2 * seg_trig
    ones_row = d_in if include_input else 0
    return seg_in, seg_trig, kp, ones_row


def _vmem_bytes(shape2, itemsize):
    r, c = shape2
    return _round_up(r, 8) * _round_up(max(c, 1), 128) * itemsize


# --------------------------- Pallas kernel body -----------------------------
def _mlp_field_kernel(x_ref, wf_ref, wr_ref, o_ref, *, num_freqs,
                      include_input, compute_dtype):
    """x_ref: (tile_b, d_in) f32, wf_ref: (hp, kp), wr_ref: (L-1, hp, hp),
    o_ref: (tile_b, out_dim).  All compute is feature-major inside."""
    tb, d_in = x_ref.shape
    out_dim = o_ref.shape[1]
    seg_in, seg_trig, _, _ = _pe_layout(d_in, num_freqs, include_input)
    f32 = jnp.float32

    # Small on-chip transpose so trig/matmuls run lane-dense [features, batch].
    x = x_ref[...].astype(f32).T                               # (d_in, tb)

    # ---- PE block: 16-row-aligned segments, bias folded via a ones row -----
    ones = jnp.ones((1, tb), f32)
    head = jnp.concatenate([x, ones], axis=0) if include_input else ones
    if seg_in > head.shape[0]:
        head = jnp.concatenate(
            [head, jnp.zeros((seg_in - head.shape[0], tb), f32)], axis=0)
    pieces = [head]

    if num_freqs > 0:
        # One sin + one cos on (d_in, tb); higher 2^k bands via double-angle
        # recurrence (log_sampling=True -> exact powers of two).
        s, c = jnp.sin(x), jnp.cos(x)
        sins, coss = [s], [c]
        for _ in range(num_freqs - 1):
            s, c = 2.0 * s * c, (c - s) * (c + s)
            sins.append(s)
            coss.append(c)
        pad_t = seg_trig - num_freqs * d_in
        if pad_t:
            zpad = jnp.zeros((pad_t, tb), f32)
            sins.append(zpad)
            coss.append(zpad)
        pieces.append(jnp.concatenate(sins, axis=0))
        pieces.append(jnp.concatenate(coss, axis=0))

    pe = jnp.concatenate(pieces, axis=0)                       # (kp, tb)

    # ---- MLP: every layer is a single MXU matmul (biases folded) -----------
    h = pe.astype(compute_dtype)
    acc = jnp.dot(wf_ref[...], h, preferred_element_type=jnp.float32)  # (hp, tb)
    n_rest = wr_ref.shape[0]
    for i in range(n_rest):
        h = jnp.maximum(acc, 0.0).astype(compute_dtype)
        acc = jnp.dot(wr_ref[i], h, preferred_element_type=jnp.float32)

    out_fm = acc[:out_dim, :]                                  # (out_dim, tb)
    o_ref[...] = out_fm.T.astype(o_ref.dtype)                  # (tb, out_dim)


# ------------------------------ wrapper --------------------------------------
def mlp_field_forward(x, weights, biases, *, pe_freqs=6, pe_include_input=True,
                      tile_b=2048, compute_dtype=jnp.bfloat16, out_dtype=None):
    """x: [B, d_in].  weights[i]: [out_i, in_i] (torch nn.Linear convention,
    layer-0 columns in torch's interleaved [x|sin f0|cos f0|...] PE order).
    biases[i]: [out_i].  Returns [B, out_dim] (dtype = out_dtype or x.dtype)."""
    B, d_in = x.shape
    num_linears = len(weights)
    hidden = weights[0].shape[0]
    out_dim = weights[-1].shape[0]
    out_dtype = x.dtype if out_dtype is None else out_dtype

    seg_in, seg_trig, kp, ones_row = _pe_layout(d_in, pe_freqs, pe_include_input)
    hp = _round_up(hidden + 1, 16)            # hidden features + ones row, padded
    base = d_in if pe_include_input else 0

    # ---- layer 1: permute torch PE columns into the kernel row order and
    # fold b1 via the ones column; add the ones-row propagation entry. -------
    W1 = weights[0].astype(jnp.float32)                       # (hidden, encoded)
    w_first = jnp.zeros((hp, kp), jnp.float32)
    if pe_include_input:
        w_first = w_first.at[:hidden, :d_in].set(W1[:, :d_in])
    for k in range(pe_freqs):
        s_src = base + 2 * k * d_in
        c_src = base + (2 * k + 1) * d_in
        s_dst = seg_in + k * d_in
        c_dst = seg_in + seg_trig + k * d_in
        w_first = w_first.at[:hidden, s_dst:s_dst + d_in].set(W1[:, s_src:s_src + d_in])
        w_first = w_first.at[:hidden, c_dst:c_dst + d_in].set(W1[:, c_src:c_src + d_in])
    w_first = w_first.at[:hidden, ones_row].set(biases[0].astype(jnp.float32))
    w_first = w_first.at[hidden, ones_row].set(1.0)
    w_first = w_first.astype(compute_dtype)

    # ---- remaining layers packed into ONE (L-1, hp, hp) array --------------
    w_rest_list = []
    for i in range(1, num_linears):
        Wi = weights[i].astype(jnp.float32)
        o_i, in_i = Wi.shape
        wi = jnp.zeros((hp, hp), jnp.float32)
        wi = wi.at[:o_i, :in_i].set(Wi)
        wi = wi.at[:o_i, hidden].set(biases[i].astype(jnp.float32))   # folded bias
        if i < num_linears - 1:
            wi = wi.at[hidden, hidden].set(1.0)                       # keep ones row
        w_rest_list.append(wi)
    w_rest = jnp.stack(w_rest_list).astype(compute_dtype)

    # ---- batch tiling: large lane-friendly tile, >= 2 blocks for v7x -------
    tile_b = max(128, (int(tile_b) // 128) * 128)
    cap = max(128, _round_up(pl.cdiv(B, 2), 128))
    tile_b = min(tile_b, cap)
    n_blocks = pl.cdiv(B, tile_b)

    kernel = functools.partial(
        _mlp_field_kernel, num_freqs=pe_freqs,
        include_input=pe_include_input, compute_dtype=compute_dtype)

    flops = 2 * n_blocks * tile_b * (hp * kp + (num_linears - 1) * hp * hp)
    transcendentals = 2 * n_blocks * tile_b * d_in
    bytes_accessed = (x.size * x.dtype.itemsize
                      + B * out_dim * jnp.dtype(out_dtype).itemsize
                      + w_first.size * w_first.dtype.itemsize
                      + w_rest.size * w_rest.dtype.itemsize)

    # Scoped-VMEM estimate: double-buffered in/out blocks + weights + live
    # f32 activations.  Only raise the limit when the default could trip (v5e).
    est_vmem = (2 * _vmem_bytes((tile_b, d_in), x.dtype.itemsize)
                + 2 * _vmem_bytes((tile_b, out_dim), jnp.dtype(out_dtype).itemsize)
                + w_first.size * w_first.dtype.itemsize
                + w_rest.size * w_rest.dtype.itemsize
                + 6 * _vmem_bytes((max(kp, hp), tile_b), 4))
    vmem_limit = None
    if est_vmem > 12 * 1024 * 1024:
        vmem_limit = int(min(2 * est_vmem, 64 * 1024 * 1024))

    out = pl.pallas_call(
        kernel,
        out_shape=jax.ShapeDtypeStruct((B, out_dim), out_dtype),
        grid=(n_blocks,),
        in_specs=[
            pl.BlockSpec((tile_b, d_in), lambda i: (i, 0)),
            # Constant index_maps -> weight blocks stay VMEM-resident.
            pl.BlockSpec(w_first.shape, lambda i: (0, 0)),
            pl.BlockSpec(w_rest.shape, lambda i: (0, 0, 0)),
        ],
        out_specs=pl.BlockSpec((tile_b, out_dim), lambda i: (i, 0)),
        compiler_params=pltpu.CompilerParams(
            dimension_semantics=("parallel",),
            vmem_limit_bytes=vmem_limit),
        cost_estimate=pl.CostEstimate(
            flops=flops, transcendentals=transcendentals,
            bytes_accessed=bytes_accessed),
    )(x, w_first, w_rest)
    return out


# ----------------------- pure-JAX reference (for checking) -------------------
def mlp_field_ref(x, weights, biases, *, pe_freqs=6, pe_include_input=True,
                  compute_dtype=jnp.float32):
    pieces = [x] if pe_include_input else []
    for k in range(pe_freqs):
        f = 2.0 ** k
        pieces.append(jnp.sin(x * f))
        pieces.append(jnp.cos(x * f))
    h = jnp.concatenate(pieces, axis=-1)
    for i, (w, b) in enumerate(zip(weights, biases)):
        h = jnp.dot(h.astype(compute_dtype), w.T.astype(compute_dtype),
                    preferred_element_type=jnp.float32) + b.astype(jnp.float32)
        if i < len(weights) - 1:
            h = jnp.maximum(h, 0.0)
    return h


# ----------------------- deterministic parameter init ------------------------
def init_params(key, input_dim, output_dim, hidden_dim, num_layers,
                pe_freqs, pe_include_input):
    encoded_dim = input_dim * (int(pe_include_input) + 2 * pe_freqs)
    dims = [encoded_dim] + [hidden_dim] * num_layers + [output_dim]
    weights, biases = [], []
    for fan_in, fan_out in zip(dims[:-1], dims[1:]):
        key, kw, kb = jax.random.split(key, 3)
        bound = 1.0 / float(fan_in) ** 0.5
        # torch nn.Linear convention: weight [out, in], bias [out].
        weights.append(jax.random.uniform(
            kw, (fan_out, fan_in), jnp.float32, -bound, bound))
        biases.append(jax.random.uniform(
            kb, (fan_out,), jnp.float32, -bound, bound))
    return weights, biases


if __name__ == "__main__":
    # Small config consistent with the module: D_in=2, D_out=3, hidden_dim=32,
    # num_layers=4, pe_freqs=6, include_input=True.  B=1000 exercises the
    # multi-block grid (2 blocks of 512 after the v7x >=2-block cap) and the
    # ragged partial last block (rows 1000..1023 masked, never written).
    B = 1000
    input_dim, output_dim = 2, 3
    hidden_dim, num_layers = 32, 4
    pe_freqs, pe_include_input = 6, True

    key = jax.random.PRNGKey(0)
    key, kx = jax.random.split(key)
    x = jax.random.normal(kx, (B, input_dim), jnp.float32)

    weights, biases = init_params(
        key, input_dim, output_dim, hidden_dim, num_layers,
        pe_freqs, pe_include_input)

    out = mlp_field_forward(
        x, weights, biases,
        pe_freqs=pe_freqs, pe_include_input=pe_include_input,
        tile_b=2048, compute_dtype=jnp.bfloat16)
    out = jax.block_until_ready(out)

    # bf16-matmul-matched reference and a full-f32 semantic check.
    ref_bf16 = mlp_field_ref(
        x, weights, biases, pe_freqs=pe_freqs,
        pe_include_input=pe_include_input, compute_dtype=jnp.bfloat16)
    ref_f32 = mlp_field_ref(
        x, weights, biases, pe_freqs=pe_freqs,
        pe_include_input=pe_include_input, compute_dtype=jnp.float32)

    assert out.shape == (B, output_dim)
    err_bf = float(jnp.max(jnp.abs(out - ref_bf16)))
    err_32 = float(jnp.max(jnp.abs(out - ref_f32)))
    assert err_bf < 2e-2, f"bf16-matched max err {err_bf}"
    assert err_32 < 1e-1, f"f32 max err {err_32}"
    print("KERNEL_OK")
</pallas_src>

<mosaic_0001>
module attributes {stable_mosaic.version = 11 : i64} {
  func.func @_mlp_field_kernel(%arg0: i32, %arg1: memref<512x2xf32, #tpu.memory_space<vmem>>, %arg2: memref<48x48xbf16, #tpu.memory_space<vmem>>, %arg3: memref<4x48x48xbf16, #tpu.memory_space<vmem>>, %arg4: memref<512x3xf32, #tpu.memory_space<vmem>>) attributes {dimension_semantics = [#tpu.dimension_semantics<parallel>], iteration_bounds = array<i64: 2>, scalar_prefetch = 0 : i64, scratch_operands = 0 : i64, tpu.core_type = #tpu.core_type<tc>, window_params = [{transform_indices = @transform_0, window_bounds = array<i64: 512, 2>}, {pipeline_mode = #tpu.pipeline_mode<synchronous>, transform_indices = @transform_1, window_bounds = array<i64: 48, 48>}, {pipeline_mode = #tpu.pipeline_mode<synchronous>, transform_indices = @transform_2, window_bounds = array<i64: 4, 48, 48>}, {transform_indices = @transform_3, window_bounds = array<i64: 512, 3>}]} {
    %c0 = arith.constant 0 : index
    %c0_0 = arith.constant 0 : index
    %0 = vector.load %arg1[%c0, %c0_0] : memref<512x2xf32, #tpu.memory_space<vmem>>, vector<512x2xf32>
    %1 = tpu.transpose %0, [1, 0] : vector<512x2xf32> -> vector<2x512xf32>
    %cst = arith.constant 1.000000e+00 : f32
    %2 = vector.broadcast %cst : f32 to vector<1x512xf32>
    %3 = tpu.concatenate %1, %2 in 0 : vector<2x512xf32>, vector<1x512xf32> -> vector<3x512xf32>
    %cst_1 = arith.constant 0.000000e+00 : f32
    %4 = vector.broadcast %cst_1 : f32 to vector<13x512xf32>
    %5 = tpu.concatenate %3, %4 in 0 : vector<3x512xf32>, vector<13x512xf32> -> vector<16x512xf32>
    %6 = math.sin %1 : vector<2x512xf32>
    %7 = math.cos %1 : vector<2x512xf32>
    %cst_2 = arith.constant 2.000000e+00 : f32
    %8 = vector.broadcast %cst_2 : f32 to vector<2x512xf32>
    %9 = arith.mulf %8, %6 : vector<2x512xf32>
    %10 = arith.mulf %9, %7 : vector<2x512xf32>
    %11 = arith.subf %7, %6 : vector<2x512xf32>
    %12 = arith.addf %7, %6 : vector<2x512xf32>
    %13 = arith.mulf %11, %12 : vector<2x512xf32>
    %cst_3 = arith.constant 2.000000e+00 : f32
    %14 = vector.broadcast %cst_3 : f32 to vector<2x512xf32>
    %15 = arith.mulf %14, %10 : vector<2x512xf32>
    %16 = arith.mulf %15, %13 : vector<2x512xf32>
    %17 = arith.subf %13, %10 : vector<2x512xf32>
    %18 = arith.addf %13, %10 : vector<2x512xf32>
    %19 = arith.mulf %17, %18 : vector<2x512xf32>
    %cst_4 = arith.constant 2.000000e+00 : f32
    %20 = vector.broadcast %cst_4 : f32 to vector<2x512xf32>
    %21 = arith.mulf %20, %16 : vector<2x512xf32>
    %22 = arith.mulf %21, %19 : vector<2x512xf32>
    %23 = arith.subf %19, %16 : vector<2x512xf32>
    %24 = arith.addf %19, %16 : vector<2x512xf32>
    %25 = arith.mulf %23, %24 : vector<2x512xf32>
    %cst_5 = arith.constant 2.000000e+00 : f32
    %26 = vector.broadcast %cst_5 : f32 to vector<2x512xf32>
    %27 = arith.mulf %26, %22 : vector<2x512xf32>
    %28 = arith.mulf %27, %25 : vector<2x512xf32>
    %29 = arith.subf %25, %22 : vector<2x512xf32>
    %30 = arith.addf %25, %22 : vector<2x512xf32>
    %31 = arith.mulf %29, %30 : vector<2x512xf32>
    %cst_6 = arith.constant 2.000000e+00 : f32
    %32 = vector.broadcast %cst_6 : f32 to vector<2x512xf32>
    %33 = arith.mulf %32, %28 : vector<2x512xf32>
    %34 = arith.mulf %33, %31 : vector<2x512xf32>
    %35 = arith.subf %31, %28 : vector<2x512xf32>
    %36 = arith.addf %31, %28 : vector<2x512xf32>
    %37 = arith.mulf %35, %36 : vector<2x512xf32>
    %cst_7 = arith.constant 0.000000e+00 : f32
    %38 = vector.broadcast %cst_7 : f32 to vector<4x512xf32>
    %39 = tpu.concatenate %6, %10, %16, %22, %28, %34, %38 in 0 : vector<2x512xf32>, vector<2x512xf32>, vector<2x512xf32>, vector<2x512xf32>, vector<2x512xf32>, vector<2x512xf32>, vector<4x512xf32> -> vector<16x512xf32>
    %40 = tpu.concatenate %7, %13, %19, %25, %31, %37, %38 in 0 : vector<2x512xf32>, vector<2x512xf32>, vector<2x512xf32>, vector<2x512xf32>, vector<2x512xf32>, vector<2x512xf32>, vector<4x512xf32> -> vector<16x512xf32>
    %41 = tpu.concatenate %5, %39, %40 in 0 : vector<16x512xf32>, vector<16x512xf32>, vector<16x512xf32> -> vector<48x512xf32>
    %42 = arith.truncf %41 : vector<48x512xf32> to vector<48x512xbf16>
    %c0_8 = arith.constant 0 : index
    %c0_9 = arith.constant 0 : index
    %43 = vector.load %arg2[%c0_8, %c0_9] : memref<48x48xbf16, #tpu.memory_space<vmem>>, vector<48x48xbf16>
    %cst_10 = arith.constant dense<0.000000e+00> : vector<48x512xf32>
    %44 = tpu.matmul %43, %42, %cst_10 {dimension_numbers = #tpu.dot_dimension_numbers<[1], [0], [0], [1], [0, 0, 1, 1], [], []>} : vector<48x48xbf16>, vector<48x512xbf16>, vector<48x512xf32> -> vector<48x512xf32>
    %cst_11 = arith.constant 0.000000e+00 : f32
    %45 = vector.broadcast %cst_11 : f32 to vector<48x512xf32>
    %46 = arith.maximumf %44, %45 : vector<48x512xf32>
    %47 = arith.truncf %46 : vector<48x512xf32> to vector<48x512xbf16>
    %c0_12 = arith.constant 0 : index
    %c0_13 = arith.constant 0 : index
    %c0_14 = arith.constant 0 : index
    %48 = vector.load %arg3[%c0_12, %c0_13, %c0_14] : memref<4x48x48xbf16, #tpu.memory_space<vmem>>, vector<1x48x48xbf16>
    %49 = vector.shape_cast %48 : vector<1x48x48xbf16> to vector<48x48xbf16>
    %cst_15 = arith.constant dense<0.000000e+00> : vector<48x512xf32>
    %50 = tpu.matmul %49, %47, %cst_15 {dimension_numbers = #tpu.dot_dimension_numbers<[1], [0], [0], [1], [0, 0, 1, 1], [], []>} : vector<48x48xbf16>, vector<48x512xbf16>, vector<48x512xf32> -> vector<48x512xf32>
    %cst_16 = arith.constant 0.000000e+00 : f32
    %51 = vector.broadcast %cst_16 : f32 to vector<48x512xf32>
    %52 = arith.maximumf %50, %51 : vector<48x512xf32>
    %53 = arith.truncf %52 : vector<48x512xf32> to vector<48x512xbf16>
    %c1 = arith.constant 1 : index
    %c0_17 = arith.constant 0 : index
    %c0_18 = arith.constant 0 : index
    %54 = vector.load %arg3[%c1, %c0_17, %c0_18] : memref<4x48x48xbf16, #tpu.memory_space<vmem>>, vector<1x48x48xbf16>
    %55 = vector.shape_cast %54 : vector<1x48x48xbf16> to vector<48x48xbf16>
    %cst_19 = arith.constant dense<0.000000e+00> : vector<48x512xf32>
    %56 = tpu.matmul %55, %53, %cst_19 {dimension_numbers = #tpu.dot_dimension_numbers<[1], [0], [0], [1], [0, 0, 1, 1], [], []>} : vector<48x48xbf16>, vector<48x512xbf16>, vector<48x512xf32> -> vector<48x512xf32>
    %cst_20 = arith.constant 0.000000e+00 : f32
    %57 = vector.broadcast %cst_20 : f32 to vector<48x512xf32>
    %58 = arith.maximumf %56, %57 : vector<48x512xf32>
    %59 = arith.truncf %58 : vector<48x512xf32> to vector<48x512xbf16>
    %c2 = arith.constant 2 : index
    %c0_21 = arith.constant 0 : index
    %c0_22 = arith.constant 0 : index
    %60 = vector.load %arg3[%c2, %c0_21, %c0_22] : memref<4x48x48xbf16, #tpu.memory_space<vmem>>, vector<1x48x48xbf16>
    %61 = vector.shape_cast %60 : vector<1x48x48xbf16> to vector<48x48xbf16>
    %cst_23 = arith.constant dense<0.000000e+00> : vector<48x512xf32>
    %62 = tpu.matmul %61, %59, %cst_23 {dimension_numbers = #tpu.dot_dimension_numbers<[1], [0], [0], [1], [0, 0, 1, 1], [], []>} : vector<48x48xbf16>, vector<48x512xbf16>, vector<48x512xf32> -> vector<48x512xf32>
    %cst_24 = arith.constant 0.000000e+00 : f32
    %63 = vector.broadcast %cst_24 : f32 to vector<48x512xf32>
    %64 = arith.maximumf %62, %63 : vector<48x512xf32>
    %65 = arith.truncf %64 : vector<48x512xf32> to vector<48x512xbf16>
    %c3 = arith.constant 3 : index
    %c0_25 = arith.constant 0 : index
    %c0_26 = arith.constant 0 : index
    %66 = vector.load %arg3[%c3, %c0_25, %c0_26] : memref<4x48x48xbf16, #tpu.memory_space<vmem>>, vector<1x48x48xbf16>
    %67 = vector.shape_cast %66 : vector<1x48x48xbf16> to vector<48x48xbf16>
    %cst_27 = arith.constant dense<0.000000e+00> : vector<48x512xf32>
    %68 = tpu.matmul %67, %65, %cst_27 {dimension_numbers = #tpu.dot_dimension_numbers<[1], [0], [0], [1], [0, 0, 1, 1], [], []>} : vector<48x48xbf16>, vector<48x512xbf16>, vector<48x512xf32> -> vector<48x512xf32>
    %69 = vector.extract_strided_slice %68 {offsets = [0, 0], sizes = [3, 512], strides = [1, 1]} : vector<48x512xf32> to vector<3x512xf32>
    %70 = tpu.transpose %69, [1, 0] : vector<3x512xf32> -> vector<512x3xf32>
    %c0_28 = arith.constant 0 : index
    %c0_29 = arith.constant 0 : index
    %71 = vector.load %arg4[%c0_28, %c0_29] : memref<512x3xf32, #tpu.memory_space<vmem>>, vector<512x3xf32>
    tpu.vector_store %arg4[%c0_28, %c0_29], %70 {strides = array<i32>} : memref<512x3xf32, #tpu.memory_space<vmem>>, vector<512x3xf32>,
    return
  }
  func.func @transform_0(%arg0: i32) -> (i32, i32) {
    %c0_i32 = arith.constant 0 : i32
    %c0_i32_0 = arith.constant 0 : i32
    return %arg0, %c0_i32 : i32, i32
  }
  func.func @transform_1(%arg0: i32) -> (i32, i32) {
    %c0_i32 = arith.constant 0 : i32
    %c0_i32_0 = arith.constant 0 : i32
    %c0_i32_1 = arith.constant 0 : i32
    return %c0_i32, %c0_i32_0 : i32, i32
  }
  func.func @transform_2(%arg0: i32) -> (i32, i32, i32) {
    %c0_i32 = arith.constant 0 : i32
    %c0_i32_0 = arith.constant 0 : i32
    %c0_i32_1 = arith.constant 0 : i32
    %c0_i32_2 = arith.constant 0 : i32
    return %c0_i32, %c0_i32_0, %c0_i32_1 : i32, i32, i32
  }
  func.func @transform_3(%arg0: i32) -> (i32, i32) {
    %c0_i32 = arith.constant 0 : i32
    %c0_i32_0 = arith.constant 0 : i32
    return %arg0, %c0_i32 : i32, i32
  }
}

</mosaic_0001>

<bundles_post_ra>
// kernel: tpu_custom_call.1
= control target key start
LH: loop header
LB: loop body
LE: loop exit
PB: predicated region body
PF: predicated region fallthrough
CT: control target
= control target key end

     0   :  { %s3461_s12 = smov 0   ;;  %s3463_s13 = smov 0   ;;  %s4610_s0 = inlined_call_operand.vmem [shape: f32[1000,2], index: 0, kind: input, shape index: {}]   ;;  %s4611_s1 = inlined_call_operand.vmem [shape: bf16[48,48], index: 1, kind: input, shape index: {}]   ;;  %s4612_s2 = inlined_call_operand.vmem [shape: bf16[4,48,48], index: 2, kind: input, shape index: {}]   ;;  %s4613_s3 = inlined_call_operand.vmem [shape: f32[1000,3], index: 3, kind: output, shape index: {}]  }
   0x1   :  { %s3465_s14 = smov 0  }
   0x2 LB: > { %s3474_s15 = sadd.s32 4294967295, %s3398_s14   ;;  %s3476_s16 = sadd.s32 1, %s3398_s14   ;;  %s3398_s14 = sphi %s3465_s14, %s4630_s14   ;;  %s3394_s13 = sphi %s3463_s13, %s4629_s13   ;;  %s3390_s12 = sphi %s3461_s12, %s4628_s12  }
   0x3   : > { %s85_s17 = ssub.s32 %s3398_s14, %s3476_s16  ;;  %s88_s18 = sadd.s32 1, %s3394_s13 }
   0x4   : > { %p86_p0 = scmp.eq.s32.totalorder %s85_s17, 0  ;;  %p98_p1 = scmp.ne.s32.totalorder %s3394_s13, %s3390_s12 }
   0x5   : > { %p99_p2 = scmp.eq.s32.totalorder %s3474_s15, 1  ;;  %p3045_p3 = scmp.ge.s32.totalorder %s3398_s14, 1 }
   0x6   : > { %s3484_s19 = scalar_select %p86_p0, %s3394_s13, %s88_s18  }
   0x7   : > { %p3486_p4 = por %p99_p2, %p98_p1  ;;  %p146_p5 = scmp.lt.s32.totalorder %s3398_s14, 3 }
   0x9   : > { %p147_p6 = pnand %p3045_p3, %p146_p5 }
   0xa   : > { %s3491_s21 = sshll.u32 (!%p147_p6), %s3474_s15, 6  ;;  %s170_s10 = sand.u32 (!%p147_p6), 1, %s3390_s12  }
   0xb   : > { %150 = sbr.rel (%p147_p6) target bundleno = 1778 (0x6f2), region = 32  ;;  %p178_p7 = scmp.lt.s32.totalorder (!%p147_p6), %s3491_s21, 124 }
   0xc   : > { %s3046_s11 = sshll.u32 (!%p147_p6), %s170_s10, 9 }
   0xd   : > { %s4274_s14 = scalar_lea.vmem (!%p147_p6), [#allocation2], %s3046_s11  }
  0x10   : > { %s179_s22 = scalar_select %p178_p7, %s3491_s21, 124 }
  0x11   : > { %s2582_s12 = ssub.s32 (%p3486_p4), 125, %s3491_s21  ;;  %s3197_s17 = sshll.u32 (%p3486_p4), %s3474_s15, 9 }
  0x12   : > { %s3048_s23 = sshll.u32 %s179_s22, 3  ;;  %p2583_p8 = scmp.lt.s32.totalorder (%p3486_p4), %s2582_s12, 64 }
  0x13   : > { %s3498_s26 = scalar_lea.vmem %s4610_s0, %s3048_s23  ;;  %s4411_s23 = scalar_lea.vmem (%p3486_p4), %s4613_s3, %s3197_s17  }
  0x14   : > { %v241_v0 = vld [vmem:[%s3498_s26 + $0x180] sm:$0xff]  ;;  %v242_v2 = vld [vmem:[%s3498_s26 + $0x188] sm:$0xff]  ;;  %v243_v4 = vld [vmem:[%s3498_s26 + $0x190] sm:$0xff] }
  0x15   : > { %v209_v1 = vld [vmem:[%s3498_s26 + $0x80] sm:$0xff]  ;;  %353 = vxpose.xlu1.b32.start [1/16] (narrow) %v241_v0, 8  ;;  %v210_v3 = vld [vmem:[%s3498_s26 + $0x88] sm:$0xff]  ;;  %v211_v5 = vld [vmem:[%s3498_s26 + $0x90] sm:$0xff] }
  0x16   : > { %289 = vxpose.xlu0.b32.start [1/16] (narrow) %v209_v1, 8  ;;  %v244_v6 = vld [vmem:[%s3498_s26 + $0x198] sm:$0xff]  ;;  %v245_v8 = vld [vmem:[%s3498_s26 + $0x1a0] sm:$0xff]  ;;  %v246_v10 = vld [vmem:[%s3498_s26 + $0x1a8] sm:$0xff] }
  0x17   : > { %v212_v7 = vld [vmem:[%s3498_s26 + $0x98] sm:$0xff]  ;;  %v213_v9 = vld [vmem:[%s3498_s26 + $0xa0] sm:$0xff]  ;;  %v214_v11 = vld [vmem:[%s3498_s26 + $0xa8] sm:$0xff] }
  0x18   : > { %v247_v12 = vld [vmem:[%s3498_s26 + $0x1b0] sm:$0xff]  ;;  %v248_v14 = vld [vmem:[%s3498_s26 + $0x1b8] sm:$0xff]  ;;  %v249_v16 = vld [vmem:[%s3498_s26 + $0x1c0] sm:$0xff] }
  0x19   : > { %354 = vxpose.xlu1.b32.cont [2/16] (narrow) %v242_v2, 8  ;;  %v215_v13 = vld [vmem:[%s3498_s26 + $0xb0] sm:$0xff]  ;;  %v216_v15 = vld [vmem:[%s3498_s26 + $0xb8] sm:$0xff]  ;;  %v217_v17 = vld [vmem:[%s3498_s26 + $0xc0] sm:$0xff] }
  0x1a   : > { %290 = vxpose.xlu0.b32.cont [2/16] (narrow) %v210_v3, 8  ;;  %v250_v18 = vld [vmem:[%s3498_s26 + $0x1c8] sm:$0xff]  ;;  %v251_v20 = vld [vmem:[%s3498_s26 + $0x1d0] sm:$0xff]  ;;  %v252_v22 = vld [vmem:[%s3498_s26 + $0x1d8] sm:$0xff] }
  0x1b   : > { %v218_v19 = vld [vmem:[%s3498_s26 + $0xc8] sm:$0xff]  ;;  %v219_v21 = vld [vmem:[%s3498_s26 + $0xd0] sm:$0xff]  ;;  %v220_v23 = vld [vmem:[%s3498_s26 + $0xd8] sm:$0xff] }
  0x1c   : > { %v253_v24 = vld [vmem:[%s3498_s26 + $0x1e0] sm:$0xff]  ;;  %v254_v26 = vld [vmem:[%s3498_s26 + $0x1e8] sm:$0xff]  ;;  %v255_v28 = vld [vmem:[%s3498_s26 + $0x1f0] sm:$0xff] }
  0x1d   : > { %355 = vxpose.xlu1.b32.cont [3/16] (narrow) %v243_v4, 8  ;;  %v221_v25 = vld [vmem:[%s3498_s26 + $0xe0] sm:$0xff]  ;;  %v222_v27 = vld [vmem:[%s3498_s26 + $0xe8] sm:$0xff]  ;;  %v223_v29 = vld [vmem:[%s3498_s26 + $0xf0] sm:$0xff] }
  0x1e   : > { %291 = vxpose.xlu0.b32.cont [3/16] (narrow) %v211_v5, 8  ;;  %v256_v30 = vld [vmem:[%s3498_s26 + $0x1f8] sm:$0xff]  ;;  %v225_v32 = vld [vmem:[%s3498_s26 + $0x100] sm:$0xff]  ;;  %v226_v34 = vld [vmem:[%s3498_s26 + $0x108] sm:$0xff] }
  0x1f   : > { %v224_v31 = vld [vmem:[%s3498_s26 + $0xf8] sm:$0xff]  ;;  %v193_v33 = vld [vmem:[%s3498_s26] sm:$0xff]  ;;  %v194_v35 = vld [vmem:[%s3498_s26 + $0x8] sm:$0xff] }
  0x20   : > { %v227_v36 = vld [vmem:[%s3498_s26 + $0x110] sm:$0xff]  ;;  %v228_v38 = vld [vmem:[%s3498_s26 + $0x118] sm:$0xff]  ;;  %v229_v40 = vld [vmem:[%s3498_s26 + $0x120] sm:$0xff] }
  0x21   : > { %356 = vxpose.xlu1.b32.cont [4/16] (narrow) %v244_v6, 8  ;;  %v195_v37 = vld [vmem:[%s3498_s26 + $0x10] sm:$0xff]  ;;  %v196_v39 = vld [vmem:[%s3498_s26 + $0x18] sm:$0xff]  ;;  %v197_v41 = vld [vmem:[%s3498_s26 + $0x20] sm:$0xff] }
  0x22   : > { %292 = vxpose.xlu0.b32.cont [4/16] (narrow) %v212_v7, 8  ;;  %v230_v42 = vld [vmem:[%s3498_s26 + $0x128] sm:$0xff]  ;;  %v231_v44 = vld [vmem:[%s3498_s26 + $0x130] sm:$0xff]  ;;  %v232_v46 = vld [vmem:[%s3498_s26 + $0x138] sm:$0xff] }
  0x23   : > { %v198_v43 = vld [vmem:[%s3498_s26 + $0x28] sm:$0xff]  ;;  %v199_v45 = vld [vmem:[%s3498_s26 + $0x30] sm:$0xff]  ;;  %v200_v47 = vld [vmem:[%s3498_s26 + $0x38] sm:$0xff] }
  0x24   : > { %v233_v48 = vld [vmem:[%s3498_s26 + $0x140] sm:$0xff]  ;;  %v234_v50 = vld [vmem:[%s3498_s26 + $0x148] sm:$0xff]  ;;  %v235_v52 = vld [vmem:[%s3498_s26 + $0x150] sm:$0xff] }
  0x25   : > { %357 = vxpose.xlu1.b32.cont [5/16] (narrow) %v245_v8, 8  ;;  %v201_v49 = vld [vmem:[%s3498_s26 + $0x40] sm:$0xff]  ;;  %v202_v51 = vld [vmem:[%s3498_s26 + $0x48] sm:$0xff]  ;;  %v203_v53 = vld [vmem:[%s3498_s26 + $0x50] sm:$0xff] }
  0x26   : > { %293 = vxpose.xlu0.b32.cont [5/16] (narrow) %v213_v9, 8  ;;  %v236_v54 = vld [vmem:[%s3498_s26 + $0x158] sm:$0xff]  ;;  %v237_v56 = vld [vmem:[%s3498_s26 + $0x160] sm:$0xff]  ;;  %v238_v58 = vld [vmem:[%s3498_s26 + $0x168] sm:$0xff] }
  0x27   : > { %v204_v55 = vld [vmem:[%s3498_s26 + $0x58] sm:$0xff]  ;;  %v205_v57 = vld [vmem:[%s3498_s26 + $0x60] sm:$0xff]  ;;  %v206_v59 = vld [vmem:[%s3498_s26 + $0x68] sm:$0xff] }
  0x28   : > { %v239_v60 = vld [vmem:[%s3498_s26 + $0x170] sm:$0xff]  ;;  %v240_v62 = vld [vmem:[%s3498_s26 + $0x178] sm:$0xff] }
  0x29   : > { %358 = vxpose.xlu1.b32.cont [6/16] (narrow) %v246_v10, 8  ;;  %v207_v61 = vld [vmem:[%s3498_s26 + $0x70] sm:$0xff]  ;;  %v208_v63 = vld [vmem:[%s3498_s26 + $0x78] sm:$0xff] }
  0x2a   : > { %294 = vxpose.xlu0.b32.cont [6/16] (narrow) %v214_v11, 8 }
  0x2d   : > { %359 = vxpose.xlu1.b32.cont [7/16] (narrow) %v247_v12, 8 }
  0x2e   : > { %295 = vxpose.xlu0.b32.cont [7/16] (narrow) %v215_v13, 8 }
  0x31   : > { %360 = vxpose.xlu1.b32.cont [8/16] (narrow) %v248_v14, 8 }
  0x32   : > { %296 = vxpose.xlu0.b32.cont [8/16] (narrow) %v216_v15, 8 }
  0x35   : > { %361 = vxpose.xlu1.b32.cont [9/16] (narrow) %v249_v16, 8 }
  0x36   : > { %297 = vxpose.xlu0.b32.cont [9/16] (narrow) %v217_v17, 8 }
  0x39   : > { %362 = vxpose.xlu1.b32.cont [10/16] (narrow) %v250_v18, 8 }
  0x3a   : > { %298 = vxpose.xlu0.b32.cont [10/16] (narrow) %v218_v19, 8 }
  0x3d   : > { %363 = vxpose.xlu1.b32.cont [11/16] (narrow) %v251_v20, 8 }
  0x3e   : > { %299 = vxpose.xlu0.b32.cont [11/16] (narrow) %v219_v21, 8 }
  0x41   : > { %364 = vxpose.xlu1.b32.cont [12/16] (narrow) %v252_v22, 8 }
  0x42   : > { %300 = vxpose.xlu0.b32.cont [12/16] (narrow) %v220_v23, 8 }
  0x45   : > { %365 = vxpose.xlu1.b32.cont [13/16] (narrow) %v253_v24, 8  ;;  %v3432_v24 = vmov 683565275  }
  0x46   : > { %301 = vxpose.xlu0.b32.cont [13/16] (narrow) %v221_v25, 8 }
  0x49   : > { %366 = vxpose.xlu1.b32.cont [14/16] (narrow) %v254_v26, 8  ;;  %v3433_v26 = vmov 2475754826  }
  0x4a   : > { %302 = vxpose.xlu0.b32.cont [14/16] (narrow) %v222_v27, 8 }
  0x4d   : > { %367 = vxpose.xlu1.b32.cont [15/16] (narrow) %v255_v28, 8  ;;  %v3434_v28 = vmov 2131351028  }
  0x4e   : > { %303 = vxpose.xlu0.b32.cont [15/16] (narrow) %v223_v29, 8 }
  0x51   : > { %368 = vxpose.xlu1.b32.end [16/16] (narrow) %v256_v30, 8  ;;  %v3435_v30 = vmov 2102212464  }
  0x52   : > { %304 = vxpose.xlu0.b32.end [16/16] (narrow) %v224_v31, 8 }
  0x55   : > { %321 = vxpose.xlu1.b32.start [1/16] (narrow) %v225_v32, 8  ;;  %v3436_v32 = vmov 920167782  }
  0x56   : > { %257 = vxpose.xlu0.b32.start [1/16] (narrow) %v193_v33, 8 }
  0x59   : > { %322 = vxpose.xlu1.b32.cont [2/16] (narrow) %v226_v34, 8 }
  0x5a   : > { %258 = vxpose.xlu0.b32.cont [2/16] (narrow) %v194_v35, 8 }
  0x5d   : > { %323 = vxpose.xlu1.b32.cont [3/16] (narrow) %v227_v36, 8 }
  0x5e   : > { %259 = vxpose.xlu0.b32.cont [3/16] (narrow) %v195_v37, 8 }
  0x61   : > { %324 = vxpose.xlu1.b32.cont [4/16] (narrow) %v228_v38, 8 }
  0x62   : > { %260 = vxpose.xlu0.b32.cont [4/16] (narrow) %v196_v39, 8 }
  0x65   : > { %325 = vxpose.xlu1.b32.cont [5/16] (narrow) %v229_v40, 8  ;;  %v3437_v40 = vmov 1326507024  }
  0x66   : > { %261 = vxpose.xlu0.b32.cont [5/16] (narrow) %v197_v41, 8 }
  0x69   : > { %326 = vxpose.xlu1.b32.cont [6/16] (narrow) %v230_v42, 8 }
  0x6a   : > { %262 = vxpose.xlu0.b32.cont [6/16] (narrow) %v198_v43, 8 }
  0x6d   : > { %327 = vxpose.xlu1.b32.cont [7/16] (narrow) %v231_v44, 8 }
  0x6e   : > { %263 = vxpose.xlu0.b32.cont [7/16] (narrow) %v199_v45, 8 }
  0x71   : > { %328 = vxpose.xlu1.b32.cont [8/16] (narrow) %v232_v46, 8 }
  0x72   : > { %264 = vxpose.xlu0.b32.cont [8/16] (narrow) %v200_v47, 8 }
  0x75   : > { %329 = vxpose.xlu1.b32.cont [9/16] (narrow) %v233_v48, 8 }
  0x76   : > { %265 = vxpose.xlu0.b32.cont [9/16] (narrow) %v201_v49, 8 }
  0x79   : > { %330 = vxpose.xlu1.b32.cont [10/16] (narrow) %v234_v50, 8 }
  0x7a   : > { %266 = vxpose.xlu0.b32.cont [10/16] (narrow) %v202_v51, 8 }
  0x7d   : > { %331 = vxpose.xlu1.b32.cont [11/16] (narrow) %v235_v52, 8 }
  0x7e   : > { %267 = vxpose.xlu0.b32.cont [11/16] (narrow) %v203_v53, 8 }
  0x81   : > { %332 = vxpose.xlu1.b32.cont [12/16] (narrow) %v236_v54, 8 }
  0x82   : > { %268 = vxpose.xlu0.b32.cont [12/16] (narrow) %v204_v55, 8 }
  0x85   : > { %333 = vxpose.xlu1.b32.cont [13/16] (narrow) %v237_v56, 8 }
  0x86   : > { %269 = vxpose.xlu0.b32.cont [13/16] (narrow) %v205_v57, 8 }
  0x89   : > { %334 = vxpose.xlu1.b32.cont [14/16] (narrow) %v238_v58, 8 }
  0x8a   : > { %270 = vxpose.xlu0.b32.cont [14/16] (narrow) %v206_v59, 8 }
  0x8d   : > { %335 = vxpose.xlu1.b32.cont [15/16] (narrow) %v239_v60, 8 }
  0x8e   : > { %271 = vxpose.xlu0.b32.cont [15/16] (narrow) %v207_v61, 8 }
  0x91   : > { %336 = vxpose.xlu1.b32.end [16/16] (narrow) %v240_v62, 8  ;;  %v3566_v1 = vpop.trf.xlu1 }
  0x92   : > { %v3564_v0 = vpop.trf.xlu0  ;;  %272 = vxpose.xlu0.b32.end [16/16] (narrow) %v208_v63, 8  ;;  %v707_v4 = vand.u32 2147483647, %v3566_v1  ;;  %v710_v5 = vand.u32 2139095040, %v3566_v1 }
  0x93   : > { %v499_v2 = vand.u32 2147483647, %v3564_v0  ;;  %v502_v3 = vand.u32 2139095040, %v3564_v0  ;;  %vm501_vm14 = vcmp.lt.s32.totalorder %v3564_v0, 0 }
  0x94   : > { %v711_v8 = vshrl.u32 %v710_v5, 23  ;;  %v714_v9 = vand.u32 8388607, %v707_v4 }
  0x95   : > { %v503_v6 = vshrl.u32 %v502_v3, 23  ;;  %v506_v7 = vand.u32 8388607, %v499_v2  ;;  %vm500_vm15 = vcmp.le.f32.partialorder %v499_v2, 0.7853982 }
  0x96   : > { %v3061_v11 = vadd.s32 4294967169, %v711_v8  ;;  %v715_v14 = vor.u32 8388608, %v714_v9 }
  0x97   : > { %v3053_v10 = vadd.s32 4294967169, %v503_v6  ;;  %v507_v13 = vor.u32 8388608, %v506_v7 }
  0x98   : > { %v717_v15 = vadd.s32 1, %v3061_v11  ;;  %v3578_v22 = vshll.u32 %v715_v14, 8 }
  0x99   : > { %v509_v12 = vadd.s32 1, %v3053_v10  ;;  %v3576_v20 = vshll.u32 %v507_v13, 8 }
  0x9a   : > { %vm718_vm1 = vcmp.gt.s32.totalorder %v717_v15, 0 }
  0x9b   : > { %vm510_vm0 = vcmp.gt.s32.totalorder %v509_v12, 0  ;;  %v719_v19 = vsel %vm718_vm1, %v717_v15, 0  ;;  %vm708_vm1 = vcmp.le.f32.partialorder %v707_v4, 0.7853982 }
  0x9c   : > { %v511_v16 = vsel %vm510_vm0, %v509_v12, 0  ;;  %v721_v21 = vand.u32 31, %v719_v19  ;;  %v3585_v34 = vshrl.u32 %v719_v19, 5  ;;  %vm709_vm0 = vcmp.lt.s32.totalorder %v3566_v1, 0 }
  0x9d   : > { %v512_v17 = vshrl.u32 %v511_v16, 5  ;;  %v513_v18 = vand.u32 31, %v511_v16 }
  0x9e   : > { %v722_v45 = vsub.s32 32, %v721_v21  ;;  %v724_v48 = vshll.u32 %v3432_v24, %v721_v21  ;;  %v727_v56 = vshll.u32 %v3433_v26, %v721_v21  ;;  %v730_v11 = vshll.u32 %v3434_v28, %v721_v21 }
  0x9f   : > { %v514_v23 = vsub.s32 32, %v513_v18  ;;  %v516_v25 = vshll.u32 %v3432_v24, %v513_v18  ;;  %v519_v27 = vshll.u32 %v3433_v26, %v513_v18  ;;  %v522_v29 = vshll.u32 %v3434_v28, %v513_v18 }
  0xa0   : > { %v525_v31 = vshll.u32 %v3435_v30, %v513_v18  ;;  %v528_v33 = vshll.u32 %v3436_v32, %v513_v18  ;;  %vm531_vm2 = vcmp.lt.s32.totalorder %v512_v17, 1  ;;  %vm532_vm3 = vcmp.lt.s32.totalorder %v512_v17, 2 }
  0xa1   : > { %v515_v35 = vshrl.u32 %v3432_v24, %v514_v23  ;;  %v517_v36 = vshrl.u32 %v3433_v26, %v514_v23  ;;  %v520_v37 = vshrl.u32 %v3434_v28, %v514_v23  ;;  %v523_v38 = vshrl.u32 %v3435_v30, %v514_v23 }
  0xa2   : > { %v526_v39 = vshrl.u32 %v3436_v32, %v514_v23  ;;  %v529_v41 = vshrl.u32 %v3437_v40, %v514_v23  ;;  %vm534_vm4 = vcmp.lt.s32.totalorder %v512_v17, 4  ;;  %vm533_vm5 = vcmp.lt.s32.totalorder %v512_v17, 3 }
  0xa3   : > { %v518_v42 = vor.u32 %v517_v36, %v516_v25  ;;  %v521_v43 = vor.u32 %v520_v37, %v519_v27  ;;  %v524_v44 = vor.u32 %v523_v38, %v522_v29  ;;  %v723_v59 = vshrl.u32 %v3432_v24, %v722_v45 }
  0xa4   : > { %v527_v46 = vor.u32 %v526_v39, %v525_v31  ;;  %v530_v47 = vor.u32 %v529_v41, %v528_v33  ;;  %v725_v60 = vshrl.u32 %v3433_v26, %v722_v45  ;;  %v728_v3 = vshrl.u32 %v3434_v28, %v722_v45 }
  0xa5   : > { %v535_v49 = vsel %vm531_vm2, %v515_v35, %v518_v42  ;;  %v536_v50 = vsel %vm534_vm4, %v524_v44, 2102212464  ;;  %v539_v51 = vsel %vm531_vm2, %v518_v42, %v521_v43  ;;  %v543_v52 = vsel %vm531_vm2, %v521_v43, %v524_v44 }
  0xa6   : > { %v537_v53 = vsel %vm533_vm5, %v521_v43, %v536_v50  ;;  %v540_v54 = vsel %vm534_vm4, %v527_v46, 920167782  ;;  %v544_v55 = vsel %vm534_vm4, %v530_v47, 1326507024  ;;  %v726_v9 = vor.u32 %v725_v60, %v724_v48 }
  0xa7   : > { %v541_v57 = vsel %vm533_vm5, %v524_v44, %v540_v54  ;;  %v545_v58 = vsel %vm533_vm5, %v527_v46, %v544_v55  ;;  %v538_v61 = vsel %vm532_vm3, %v535_v49, %v537_v53  ;;  %v729_v10 = vor.u32 %v728_v3, %v727_v56 }
  0xa8   : > { %v542_v62 = vsel %vm532_vm3, %v539_v51, %v541_v57  ;;  %v546_v63 = vsel %vm532_vm3, %v543_v52, %v545_v58  ;;  %v731_v12 = vshrl.u32 %v3435_v30, %v722_v45  ;;  %v733_v13 = vshll.u32 %v3435_v30, %v721_v21 }
  0xa9   : > { %v3605_v5 = vmul.u32.u64.low %v3576_v20, %v546_v63  ;;  %v3606_v6 = vmul.u32.u64.high %v3576_v20, %v546_v63, %v3605_v5  ;;  %v3609_v7 = vmul.u32.u64.low %v3576_v20, %v542_v62  ;;  %v3610_v8 = vmul.u32.u64.high %v3576_v20, %v542_v62, %v3609_v7 }
  0xaa   : > { %v734_v14 = vshrl.u32 %v3436_v32, %v722_v45  ;;  %v736_v15 = vshll.u32 %v3436_v32, %v721_v21  ;;  %v737_v16 = vshrl.u32 %v3437_v40, %v722_v45  ;;  %v554_v17 = vmul.u32 %v3576_v20, %v538_v61 }
  0xab   : > { %v732_v18 = vor.u32 %v731_v12, %v730_v11  ;;  %vm739_vm6 = vcmp.lt.s32.totalorder %v3585_v34, 1  ;;  %vm740_vm7 = vcmp.lt.s32.totalorder %v3585_v34, 2  ;;  %vm556_vm8 = vc.u32 %v3606_v6, %v3609_v7 }
  0xac   : > { %v557_v19 = vadd.s32 1, %v3610_v8  ;;  %v735_v23 = vor.u32 %v734_v14, %v733_v13  ;;  %vm741_vm9 = vcmp.lt.s32.totalorder %v3585_v34, 3  ;;  %v738_v25 = vor.u32 %v737_v16, %v736_v15 }
  0xad   : > { %vm742_vm10 = vcmp.lt.s32.totalorder %v3585_v34, 4  ;;  %v743_v21 = vsel %vm739_vm6, %v723_v59, %v726_v9  ;;  %v747_v27 = vsel %vm739_vm6, %v726_v9, %v729_v10  ;;  %v751_v33 = vsel %vm739_vm6, %v729_v10, %v732_v18 }
  0xae   : > { %v558_v29 = vsel %vm556_vm8, %v557_v19, %v3610_v8  ;;  %v744_v20 = vsel %vm742_vm10, %v732_v18, 2102212464  ;;  %v748_v31 = vsel %vm742_vm10, %v735_v23, 920167782  ;;  %v752_v38 = vsel %vm742_vm10, %v738_v25, 1326507024 }
  0xaf   : > { %v559_v35 = vadd.s32 %v558_v29, %v554_v17  ;;  %v745_v36 = vsel %vm741_vm9, %v729_v10, %v744_v20  ;;  %v749_v37 = vsel %vm741_vm9, %v732_v18, %v748_v31  ;;  %v753_v42 = vsel %vm741_vm9, %v735_v23, %v752_v38 }
  0xb0   : > { %v746_v39 = vsel %vm740_vm7, %v743_v21, %v745_v36  ;;  %v750_v41 = vsel %vm740_vm7, %v747_v27, %v749_v37  ;;  %v754_v44 = vsel %vm740_vm7, %v751_v33, %v753_v42  ;;  %vm591_vm8 = vweird.f32 %v3564_v0 }
  0xb1   : > { %v560_v43 = vadd.s32 536870912, %v559_v35  ;;  %v3633_v45 = vmul.u32.u64.low %v3578_v22, %v750_v41  ;;  %v3634_v46 = vmul.u32.u64.high %v3578_v22, %v750_v41, %v3633_v45  ;;  %v762_v50 = vmul.u32 %v3578_v22, %v746_v39 }
  0xb2   : > { %v3637_v47 = vmul.u32.u64.low %v3578_v22, %v754_v44  ;;  %v3638_v48 = vmul.u32.u64.high %v3578_v22, %v754_v44, %v3637_v47  ;;  %v555_v22 = vadd.s32 %v3609_v7, %v3606_v6 }
  0xb3   : > { %v561_v49 = vshrl.u32 %v560_v43, 30  ;;  %v765_v52 = vadd.s32 1, %v3634_v46 }
  0xb4   : > { %vm764_vm11 = vc.u32 %v3638_v48, %v3633_v45  ;;  %v763_v23 = vadd.s32 %v3633_v45, %v3638_v48 }
  0xb5   : > { %v562_v51 = vshll.u32 %v561_v49, 30  ;;  %v766_v34 = vsel %vm764_vm11, %v765_v52, %v3634_v46  ;;  %v585_v19 = vsub.s32 4, %v561_v49 }
  0xb6   : > { %v767_v54 = vadd.s32 %v766_v34, %v762_v50 }
  0xb7   : > { %v563_v53 = vsub.s32 %v559_v35, %v562_v51  ;;  %v586_v20 = vsel %vm501_vm14, %v585_v19, %v561_v49 }
  0xb8   : > { %v768_v56 = vadd.s32 536870912, %v767_v54  ;;  %v588_v39 = vsel %vm500_vm15, 0, %v586_v20 }
  0xb9   : > { %v565_v55 = vsub.s32 0, %v563_v53  ;;  %v592_v47 = vadd.s32 3, %v588_v39  ;;  %v3676_v4 = vand.u32 3, %v588_v39 }
  0xba   : > { %v3644_v58 = vshrl.u32 %v768_v56, 30 }
  0xbb   : > { %v3054_v57 = vmin.u32 %v565_v55, %v563_v53  ;;  %v3664_v55 = vand.u32 3, %v592_v47 }
  0xbc   : > { %v770_v60 = vshll.u32 %v3644_v58, 30  ;;  %v793_v49 = vsub.s32 4, %v3644_v58 }
  0xbd   : > { %v567_v59 = vclz %v3054_v57  ;;  %vm595_vm3 = vcmp.eq.s32.totalorder %v3664_v55, 0  ;;  %vm598_vm4 = vcmp.eq.s32.totalorder %v3664_v55, 2  ;;  %vm594_vm5 = vcmp.lt.s32.totalorder %v3664_v55, 2 }
  0xbe   : > { %v771_v62 = vsub.s32 %v767_v54, %v770_v60  ;;  %v794_v57 = vsel %vm709_vm0, %v793_v49, %v3644_v58 }
  0xbf   : > { %v3055_v61 = vadd.s32 4294967294, %v567_v59 }
  0xc0   : > { %v773_v3 = vsub.s32 0, %v771_v62 }
  0xc1   : > { %vm3056_vm12 = vcmp.lt.s32.totalorder %v3055_v61, 0 }
  0xc2   : > { %v570_v63 = vsel %vm3056_vm12, 0, %v3055_v61  ;;  %v3062_v10 = vmin.u32 %v773_v3, %v771_v62  ;;  %v3671_v3 = vsel %vm708_vm1, 0, %v794_v57  ;;  %vm1009_vm12 = vcmp.eq.s32.totalorder %v3676_v4, 0 }
  0xc3   : > { %v571_v5 = vsub.s32 32, %v570_v63  ;;  %v572_v8 = vshll.u32 %v563_v53, %v570_v63  ;;  %v575_v9 = vsub.s32 4294967266, %v570_v63 }
  0xc4   : > { %v775_v13 = vclz %v3062_v10 }
  0xc5   : > { %v573_v11 = vshrl.u32 %v555_v22, %v571_v5  ;;  %v576_v12 = vadd.s32 127, %v575_v9 }
  0xc6   : > { %v3063_v16 = vadd.s32 4294967294, %v775_v13 }
  0xc7   : > { %v574_v14 = vor.u32 %v573_v11, %v572_v8  ;;  %v577_v15 = vshll.u32 %v576_v12, 23  ;;  %v3438_v8 = vmov 0   ;;  %v800_v11 = vadd.s32 3, %v3671_v3 }
  0xc8   : > { %vm3064_vm13 = vcmp.lt.s32.totalorder %v3063_v16, 0  ;;  %1536 = vmatprep.mubr.bf16.mxu0 %v3438_v8  ;;  %1599 = vmatprep.mubr.bf16.mxu1 %v3438_v8 }
  0xc9   : > { %v578_v17 = vor.u32 4788187, %v577_v15  ;;  %v581_v18 = vcvt.s32.f32 %v574_v14  ;;  %v778_v7 = vsel %vm3064_vm13, 0, %v3063_v16  ;;  %vm1012_vm13 = vcmp.eq.s32.totalorder %v3676_v4, 2 }
  0xca   : > { %v779_v25 = vsub.s32 32, %v778_v7  ;;  %v780_v21 = vshll.u32 %v771_v62, %v778_v7  ;;  %v783_v27 = vsub.s32 4294967266, %v778_v7 }
  0xcb   : > { %v579_v6 = vand.u32 2147483647, %v578_v17 }
  0xcc   : > { %v781_v31 = vshrl.u32 %v763_v23, %v779_v25  ;;  %v784_v33 = vadd.s32 127, %v783_v27 }
  0xcd   : > { %v582_v29 = vmul.f32 %v581_v18, %v579_v6 }
  0xce   : > { %v782_v36 = vor.u32 %v781_v31, %v780_v21  ;;  %v785_v37 = vshll.u32 %v784_v33, 23 }
  0xcf   : > { %v583_v35 = vxor.u32 2147483648, %v582_v29 }
  0xd0   : > { %v786_v43 = vor.u32 4788187, %v785_v37  ;;  %v789_v44 = vcvt.s32.f32 %v782_v36 }
  0xd1   : > { %v584_v38 = vsel %vm501_vm14, %v583_v35, %v582_v29  ;;  %v3652_v41 = vpop.trf.xlu1 }
  0xd2   : > { %v587_v42 = vsel %vm500_vm15, %v3564_v0, %v584_v38  ;;  %v603_v45 = vand.u32 2147483647, %v3652_v41  ;;  %v3656_v46 = vpop.trf.xlu0  ;;  %v606_v2 = vand.u32 2139095040, %v3652_v41  ;;  %v787_v48 = vand.u32 2147483647, %v786_v43 }
  0xd3   : > { %3328 = vcosq.f32 %v587_v42  ;;  %v398_v51 = vand.u32 2139095040, %v3656_v46  ;;  %v395_v22 = vand.u32 2147483647, %v3656_v46 }
  0xd4   : > { %3330 = vsinq.f32 %v587_v42  ;;  %v607_v50 = vshrl.u32 %v606_v2, 23  ;;  %v790_v52 = vmul.f32 %v789_v44, %v787_v48  ;;  %v610_v53 = vand.u32 8388607, %v603_v45 }
  0xd5   : > { %v399_v54 = vshrl.u32 %v398_v51, 23  ;;  %v402_v13 = vand.u32 8388607, %v395_v22 }
  0xd6   : > { %v3057_v34 = vadd.s32 4294967169, %v607_v50  ;;  %v791_v56 = vxor.u32 2147483648, %v790_v52  ;;  %v611_v62 = vor.u32 8388608, %v610_v53 }
  0xd7   : > { %v3049_v60 = vadd.s32 4294967169, %v399_v54 }
  0xd8   : > { %v613_v59 = vadd.s32 1, %v3057_v34  ;;  %v792_v61 = vsel %vm709_vm0, %v791_v56, %v790_v52  ;;  %v3681_v12 = vshll.u32 %v611_v62, 8 }
  0xd9   : > { %v795_v63 = vsel %vm708_vm1, %v3566_v1, %v792_v61  ;;  %v405_v5 = vadd.s32 1, %v3049_v60 }
  0xda   : > { %vm614_vm2 = vcmp.gt.s32.totalorder %v613_v59, 0  ;;  %3332 = vcosq.f32 %v795_v63 }
  0xdb   : > { %v615_v58 = vsel %vm614_vm2, %v613_v59, 0  ;;  %3334 = vsinq.f32 %v795_v63  ;;  %vm406_vm6 = vcmp.gt.s32.totalorder %v405_v5, 0  ;;  %v403_v59 = vor.u32 8388608, %v402_v13 }
  0xdc   : > { %v616_v9 = vshrl.u32 %v615_v58, 5  ;;  %v617_v10 = vand.u32 31, %v615_v58  ;;  %v407_v50 = vsel %vm406_vm6, %v405_v5, 0 }
  0xdd   : > { %v3730_v55 = vshrl.u32 %v407_v50, 5  ;;  %v409_v13 = vand.u32 31, %v407_v50 }
  0xde   : > { %v618_v14 = vsub.s32 32, %v617_v10  ;;  %v620_v15 = vshll.u32 %v3432_v24, %v617_v10  ;;  %v623_v16 = vshll.u32 %v3433_v26, %v617_v10  ;;  %v626_v18 = vshll.u32 %v3434_v28, %v617_v10 }
  0xdf   : > { %v629_v19 = vshll.u32 %v3435_v30, %v617_v10  ;;  %v632_v23 = vshll.u32 %v3436_v32, %v617_v10  ;;  %vm635_vm7 = vcmp.lt.s32.totalorder %v616_v9, 1  ;;  %vm637_vm9 = vcmp.lt.s32.totalorder %v616_v9, 3 }
  0xe0   : > { %v3687_v17 = vpop.eup %3328  ;;  %v619_v25 = vshrl.u32 %v3432_v24, %v618_v14  ;;  %v621_v21 = vshrl.u32 %v3433_v26, %v618_v14  ;;  %v624_v27 = vshrl.u32 %v3434_v28, %v618_v14  ;;  %v627_v20 = vshrl.u32 %v3435_v30, %v618_v14 }
  0xe1   : > { %v3692_v6 = vpop.eup %3330  ;;  %v599_v7 = vxor.u32 2147483648, %v3687_v17  ;;  %v630_v31 = vshrl.u32 %v3436_v32, %v618_v14  ;;  %v633_v33 = vshrl.u32 %v3437_v40, %v618_v14  ;;  %vm636_vm10 = vcmp.lt.s32.totalorder %v616_v9, 2 }
  0xe2   : > { %v596_v29 = vxor.u32 2147483648, %v3692_v6  ;;  %v622_v36 = vor.u32 %v621_v21, %v620_v15  ;;  %v625_v37 = vor.u32 %v624_v27, %v623_v16  ;;  %v628_v39 = vor.u32 %v627_v20, %v626_v18 }
  0xe3   : > { %v600_v35 = vsel %vm598_vm4, %v599_v7, %v3692_v6  ;;  %v631_v42 = vor.u32 %v630_v31, %v629_v19  ;;  %v634_v43 = vor.u32 %v633_v33, %v632_v23  ;;  %vm638_vm11 = vcmp.lt.s32.totalorder %v616_v9, 4 }
  0xe4   : > { %v597_v38 = vsel %vm595_vm3, %v3687_v17, %v596_v29  ;;  %v639_v44 = vsel %vm635_vm7, %v619_v25, %v622_v36  ;;  %v643_v2 = vsel %vm635_vm7, %v622_v36, %v625_v37  ;;  %v640_v47 = vsel %vm638_vm11, %v628_v39, 2102212464 }
  0xe5   : > { %v644_v48 = vsel %vm638_vm11, %v631_v42, 920167782  ;;  %v647_v49 = vsel %vm635_vm7, %v625_v37, %v628_v39  ;;  %v601_v51 = vsel %vm594_vm5, %v597_v38, %v600_v35  ;;  %v641_v52 = vsel %vm637_vm9, %v625_v37, %v640_v47 }
  0xe6   : > { %v645_v53 = vsel %vm637_vm9, %v628_v39, %v644_v48  ;;  %v648_v34 = vsel %vm638_vm11, %v634_v43, 1326507024  ;;  %v642_v54 = vsel %vm636_vm10, %v639_v44, %v641_v52  ;;  %v3736_v5 = vsel %vm591_vm8, nan, %v601_v51 }
  0xe7   : > { %v646_v56 = vsel %vm636_vm10, %v643_v2, %v645_v53  ;;  %v649_v57 = vsel %vm637_vm9, %v631_v42, %v648_v34  ;;  %v3732_v63 = vpop.eup %3332  ;;  %v3744_v14 = vand.u32 3, %v800_v11  ;;  %v658_v15 = vmul.u32 %v3681_v12, %v642_v54 }
  0xe8   : > { %v650_v60 = vsel %vm636_vm10, %v647_v49, %v649_v57  ;;  %v3726_v61 = vmul.u32.u64.low %v3681_v12, %v646_v56  ;;  %v3727_v62 = vmul.u32.u64.high %v3681_v12, %v646_v56, %v3726_v61  ;;  %v3742_v9 = vpop.eup %3334  ;;  %v410_v16 = vsub.s32 32, %v409_v13 }
  0xe9   : > { %v3739_v58 = vmul.u32.u64.low %v3681_v12, %v650_v60  ;;  %v3740_v10 = vmul.u32.u64.high %v3681_v12, %v650_v60, %v3739_v58  ;;  %v3748_v18 = vshll.u32 %v403_v59, 8  ;;  %v1224_v19 = vmul.f32 2.0, %v3736_v5 }
  0xea   : > { %v807_v23 = vxor.u32 2147483648, %v3732_v63  ;;  %v661_v25 = vadd.s32 1, %v3727_v62  ;;  %vm427_vm14 = vcmp.lt.s32.totalorder %v3730_v55, 1  ;;  %v412_v11 = vshll.u32 %v3432_v24, %v409_v13 }
  0xeb   : > { %vm660_vm15 = vc.u32 %v3740_v10, %v3726_v61  ;;  %v415_v12 = vshll.u32 %v3433_v26, %v409_v13  ;;  %vm428_vm0 = vcmp.lt.s32.totalorder %v3730_v55, 2  ;;  %vm803_vm1 = vcmp.eq.s32.totalorder %v3744_v14, 0 }
  0xec   : > { %vm806_vm2 = vcmp.eq.s32.totalorder %v3744_v14, 2  ;;  %v662_v21 = vsel %vm660_vm15, %v661_v25, %v3727_v62  ;;  %v413_v27 = vshrl.u32 %v3433_v26, %v410_v16  ;;  %v416_v20 = vshrl.u32 %v3434_v28, %v410_v16 }
  0xed   : > { %v418_v31 = vshll.u32 %v3434_v28, %v409_v13  ;;  %vm1008_vm3 = vcmp.lt.s32.totalorder %v3676_v4, 2  ;;  %v663_v33 = vadd.s32 %v662_v21, %v658_v15  ;;  %v419_v35 = vshrl.u32 %v3435_v30, %v410_v16 }
  0xee   : > { %v421_v36 = vshll.u32 %v3435_v30, %v409_v13  ;;  %v422_v37 = vshrl.u32 %v3436_v32, %v410_v16  ;;  %v414_v38 = vor.u32 %v413_v27, %v412_v11  ;;  %v417_v39 = vor.u32 %v416_v20, %v415_v12 }
  0xef   : > { %v424_v42 = vshll.u32 %v3436_v32, %v409_v13  ;;  %v425_v43 = vshrl.u32 %v3437_v40, %v410_v16  ;;  %v664_v26 = vadd.s32 536870912, %v663_v33  ;;  %v420_v44 = vor.u32 %v419_v35, %v418_v31 }
  0xf0   : > { %v423_v2 = vor.u32 %v422_v37, %v421_v36  ;;  %vm429_vm4 = vcmp.lt.s32.totalorder %v3730_v55, 3  ;;  %v411_v28 = vshrl.u32 %v3432_v24, %v410_v16  ;;  %vm430_vm5 = vcmp.lt.s32.totalorder %v3730_v55, 4 }
  0xf1   : > { %v426_v47 = vor.u32 %v425_v43, %v424_v42  ;;  %v435_v30 = vsel %vm427_vm14, %v414_v38, %v417_v39  ;;  %v3777_v48 = vshrl.u32 %v664_v26, 30  ;;  %v432_v49 = vsel %vm430_vm5, %v420_v44, 2102212464 }
  0xf2   : > { %v436_v50 = vsel %vm430_vm5, %v423_v2, 920167782  ;;  %v1011_v32 = vsel %vm1009_vm12, %v3687_v17, %v596_v29  ;;  %v439_v24 = vsel %vm427_vm14, %v417_v39, %v420_v44  ;;  %v1014_v52 = vsel %vm1012_vm13, %v599_v7, %v3692_v6 }
  0xf3   : > { %v437_v40 = vsel %vm429_vm4, %v420_v44, %v436_v50  ;;  %v440_v51 = vsel %vm430_vm5, %v426_v47, 1326507024  ;;  %v804_v53 = vxor.u32 2147483648, %v3742_v9  ;;  %v666_v34 = vshll.u32 %v3777_v48, 30 }
  0xf4   : > { %v431_v29 = vsel %vm427_vm14, %v411_v28, %v414_v38  ;;  %v438_v54 = vsel %vm428_vm0, %v435_v30, %v437_v40  ;;  %v433_v56 = vsel %vm429_vm4, %v417_v39, %v432_v49  ;;  %v441_v57 = vsel %vm429_vm4, %v423_v2, %v440_v51 }
  0xf5   : > { %v3804_v17 = vmul.u32.u64.low %v3748_v18, %v438_v54  ;;  %v3805_v59 = vmul.u32.u64.high %v3748_v18, %v438_v54, %v3804_v17  ;;  %v1213_v6 = vand.u32 3, %v3671_v3  ;;  %v3809_v7 = vsub.s32 %v663_v33, %v666_v34 }
  0xf6   : > { %v442_v60 = vsel %vm428_vm0, %v439_v24, %v441_v57  ;;  %v1015_v62 = vsel %vm1008_vm3, %v1011_v32, %v1014_v52  ;;  %vm802_vm6 = vcmp.lt.s32.totalorder %v3744_v14, 2  ;;  %v805_v3 = vsel %vm803_vm1, %v3732_v63, %v804_v53 }
  0xf7   : > { %v3817_v58 = vmul.u32.u64.low %v3748_v18, %v442_v60  ;;  %v3818_v13 = vmul.u32.u64.high %v3748_v18, %v442_v60, %v3817_v58  ;;  %v3822_v15 = vsel %vm591_vm8, nan, %v1015_v62  ;;  %v808_v4 = vsel %vm806_vm2, %v807_v23, %v3742_v9 }
  0xf8   : > { %v669_v16 = vsub.s32 0, %v3809_v7  ;;  %v434_v25 = vsel %vm428_vm0, %v431_v29, %v433_v56  ;;  %v453_v11 = vadd.s32 1, %v3805_v59  ;;  %v3837_v12 = vmul.f32 %v1224_v19, %v3822_v15 }
  0xf9   : > { %v1232_v21 = vsub.f32 %v3822_v15, %v3736_v5  ;;  %v1236_v27 = vadd.f32 %v3822_v15, %v3736_v5  ;;  %vm799_vm7 = vweird.f32 %v3566_v1  ;;  %vm452_vm8 = vc.u32 %v3818_v13, %v3804_v17 }
  0xfa   : > { %v3058_v20 = vmin.u32 %v669_v16, %v3809_v7  ;;  %vm1215_vm9 = vcmp.eq.s32.totalorder %v1213_v6, 0  ;;  %v809_v19 = vsel %vm802_vm6, %v805_v3, %v808_v4  ;;  %v450_v33 = vmul.u32 %v3748_v18, %v434_v25 }
  0xfb   : > { %v3847_v55 = vmul.f32 %v1236_v27, %v1232_v21  ;;  %vm1218_vm10 = vcmp.eq.s32.totalorder %v1213_v6, 2  ;;  %v454_v35 = vsel %vm452_vm8, %v453_v11, %v3805_v59  ;;  %v1244_v36 = vmul.f32 2.0, %v3837_v12 }
  0xfc   : > { %v671_v31 = vclz %v3058_v20  ;;  %v659_v39 = vadd.s32 %v3726_v61, %v3740_v10  ;;  %v455_v14 = vadd.s32 %v454_v35, %v450_v33  ;;  %vm1214_vm11 = vcmp.lt.s32.totalorder %v1213_v6, 2 }
  0xfd   : > { %v1252_v37 = vsub.f32 %v3847_v55, %v3837_v12  ;;  %v1256_v38 = vadd.f32 %v3847_v55, %v3837_v12  ;;  %v3862_v18 = vsel %vm799_vm7, nan, %v809_v19  ;;  %v689_v43 = vsub.s32 4, %v3777_v48 }
  0xfe   : > { %v3059_v42 = vadd.s32 4294967294, %v671_v31  ;;  %v3866_v26 = vmul.f32 %v1244_v36, %v3847_v55  ;;  %v456_v2 = vadd.s32 536870912, %v455_v14  ;;  %v1217_v28 = vsel %vm1215_vm9, %v3732_v63, %v804_v53 }
  0xff   : > { %v1260_v44 = vmul.f32 %v1256_v38, %v1252_v37  ;;  %v1220_v61 = vsel %vm1218_vm10, %v807_v23, %v3742_v9  ;;  %vm1375_vm13 = vcmask 1043456   ;;  %vm385_vm14 = vcmask 1041408  }
 0x100   : > { %vm3060_vm12 = vcmp.lt.s32.totalorder %v3059_v42, 0  ;;  %v1264_v47 = vmul.f32 2.0, %v3866_v26  ;;  %v3878_v24 = vshrl.u32 %v456_v2, 30  ;;  %vm605_vm15 = vcmp.lt.s32.totalorder %v3652_v41, 0 }
 0x101   : > { %v674_v10 = vsel %vm3060_vm12, 0, %v3059_v42  ;;  %v1272_v30 = vsub.f32 %v1260_v44, %v3866_v26  ;;  %v1276_v49 = vadd.f32 %v1260_v44, %v3866_v26  ;;  %vm1380_vm0 = vcmask 1045504  }
 0x102   : > { %v675_v50 = vsub.s32 32, %v674_v10  ;;  %v676_v32 = vshll.u32 %v3809_v7, %v674_v10  ;;  %v679_v40 = vsub.s32 4294967266, %v674_v10  ;;  %v3881_v63 = vmul.f32 %v1264_v47, %v1260_v44 }
 0x103   : > { %v1280_v9 = vmul.f32 %v1276_v49, %v1272_v30  ;;  %v458_v52 = vshll.u32 %v3878_v24, 30  ;;  %v1221_v53 = vsel %vm1214_vm11, %v1217_v28, %v1220_v61  ;;  %v1226_v34 = vmul.f32 2.0, %v3862_v18 }
 0x104   : > { %v677_v23 = vshrl.u32 %v659_v39, %v675_v50  ;;  %v680_v51 = vadd.s32 127, %v679_v40  ;;  %v1284_v29 = vmul.f32 2.0, %v3881_v63  ;;  %v690_v7 = vsel %vm605_vm15, %v689_v43, %v3777_v48 }
 0x105   : > { %v1292_v54 = vsub.f32 %v1280_v9, %v3881_v63  ;;  %v1296_v56 = vadd.f32 %v1280_v9, %v3881_v63  ;;  %v3892_v60 = vsub.s32 %v455_v14, %v458_v52  ;;  %v1398_v58 = vrot.slane %v3847_v55, 6 }
 0x106   : > { %v678_v57 = vor.u32 %v677_v23, %v676_v32  ;;  %v681_v59 = vshll.u32 %v680_v51, 23  ;;  %v3894_v62 = vmul.f32 %v1284_v29, %v1280_v9  ;;  %v3899_v3 = vsel %vm799_vm7, nan, %v1221_v53 }
 0x107   : > { %v1300_v6 = vmul.f32 %v1296_v56, %v1292_v54  ;;  %v461_v25 = vsub.s32 0, %v3892_v60  ;;  %v1410_v11 = vrot.slane %v1260_v44, 4  ;;  %v1422_v27 = vrot.slane %v1280_v9, 2 }
 0x108   : > { %v682_v4 = vor.u32 4788187, %v681_v59  ;;  %v685_v16 = vcvt.s32.f32 %v678_v57  ;;  %v3905_v20 = vmul.f32 %v1226_v34, %v3899_v3  ;;  %vm3909_vm1 = vcmp.le.f32.partialorder %v603_v45, 0.7853982 }
 0x109   : > { %v1312_v21 = vsub.f32 %v1300_v6, %v3894_v62  ;;  %v1316_v48 = vadd.f32 %v1300_v6, %v3894_v62  ;;  %v3050_v31 = vmin.u32 %v461_v25, %v3892_v60  ;;  %v1442_v35 = vsel %vm385_vm14, %v3822_v15, %v1398_v58 }
 0x10a   : > { %v683_v19 = vand.u32 2147483647, %v682_v4  ;;  %v1234_v36 = vsub.f32 %v3899_v3, %v3862_v18  ;;  %v1328_v37 = vrot.slane %v3837_v12, 6  ;;  %v692_v39 = vsel %vm3909_vm1, 0, %v690_v7 }
 0x10b   : > { %v1320_v33 = vmul.f32 %v1316_v48, %v1312_v21  ;;  %v463_v45 = vclz %v3050_v31  ;;  %v1446_v42 = vsel %vm1375_vm13, %v1442_v35, %v1410_v11  ;;  %v1238_v44 = vadd.f32 %v3899_v3, %v3862_v18 }
 0x10c   : > { %v686_v38 = vmul.f32 %v685_v16, %v683_v19  ;;  %v1450_v43 = vsel %vm1380_vm0, %v1446_v42, %v1422_v27  ;;  %v1246_v15 = vmul.f32 2.0, %v3905_v20  ;;  %v1304_v61 = vmul.f32 2.0, %v3894_v62 }
 0x10d   : > { %v1434_v14 = vrot.slane %v1320_v33, 6  ;;  %v3051_v28 = vadd.s32 4294967294, %v463_v45  ;;  %v1340_v12 = vrot.slane %v3866_v26, 4  ;;  %vm3439_vm2 = vmmov 1  }
 0x10e   : > { %v687_v2 = vxor.u32 2147483648, %v686_v38  ;;  %vm3931_vm3 = vmpackc.low %vm1375_vm13, %vm3439_vm2  ;;  %v1242_v30 = vmul.f32 %v1238_v44, %v1234_v36  ;;  %v1352_v49 = vrot.slane %v3881_v63, 2  ;;  %v1372_v50 = vsel %vm385_vm14, %v3736_v5, %v1328_v37 }
 0x10f   : > { %v1454_v10 = vsel %vm385_vm14, %v1300_v6, %v1434_v14  ;;  %vm3052_vm4 = vcmp.lt.s32.totalorder %v3051_v28, 0  ;;  %v1308_v40 = vmul.f32 %v1304_v61, %v1300_v6  ;;  %v451_v63 = vadd.s32 %v3804_v17, %v3818_v13 }
 0x110   : > { %v688_v32 = vsel %vm605_vm15, %v687_v2, %v686_v38  ;;  %v3085_v26 = vpack.c.bf16 %v1454_v10, %v1450_v43  ;;  %v466_v23 = vsel %vm3052_vm4, 0, %v3051_v28  ;;  %v3943_v51 = vmul.f32 %v1246_v15, %v1242_v30 }
 0x111   : > { %v691_v9 = vsel %vm3909_vm1, %v3652_v41, %v688_v32  ;;  %v1254_v52 = vsub.f32 %v1242_v30, %v3905_v20  ;;  %v467_v5 = vsub.s32 32, %v466_v23  ;;  %v471_v53 = vsub.s32 4294967266, %v466_v23 }
 0x112   : > { %3336 = vcosq.f32 %v691_v9  ;;  %3086 = vmatprep.subr.msk.bf16.mxu0 %vm3931_vm3, %v3085_v26  ;;  %v468_v34 = vshll.u32 %v3892_v60, %v466_v23  ;;  %v1258_v29 = vadd.f32 %v1242_v30, %v3905_v20  ;;  %v1266_v54 = vmul.f32 2.0, %v3943_v51 }
 0x113   : > { %3338 = vsinq.f32 %v691_v9  ;;  %v469_v56 = vshrl.u32 %v451_v63, %v467_v5  ;;  %v472_v57 = vadd.s32 127, %v471_v53  ;;  %v1364_v59 = vrot.slane %v1308_v40, 6 }
 0x114   : > { %v1377_v7 = vsel %vm1375_vm13, %v1372_v50, %v1340_v12  ;;  %v1262_v6 = vmul.f32 %v1258_v29, %v1254_v52  ;;  %v696_v13 = vadd.s32 3, %v692_v39  ;;  %v1400_v48 = vrot.slane %v1242_v30, 6 }
 0x115   : > { %v3955_v17 = vsel %vm1380_vm0, %v1377_v7, %v1352_v49  ;;  %v470_v58 = vor.u32 %v469_v56, %v468_v34  ;;  %v473_v4 = vshll.u32 %v472_v57, 23  ;;  %v3959_v16 = vsel %vm385_vm14, %v3894_v62, %v1364_v59 }
 0x116   : > { %v3961_v60 = vmul.f32 %v1266_v54, %v1262_v6  ;;  %v1274_v25 = vsub.f32 %v1262_v6, %v3943_v51  ;;  %v1278_v11 = vadd.f32 %v1262_v6, %v3943_v51  ;;  %v3091_v27 = vpack.c.bf16 %v3959_v16, %v3955_v17 }
 0x117   : > { %v474_v21 = vor.u32 4788187, %v473_v4  ;;  %v1110_v55 = vand.u32 3, %v692_v39  ;;  %v697_v33 = vand.u32 3, %v696_v13  ;;  %v477_v36 = vcvt.s32.f32 %v470_v58 }
 0x118   : > { %v1282_v19 = vmul.f32 %v1278_v11, %v1274_v25  ;;  %v1286_v31 = vmul.f32 2.0, %v3961_v60  ;;  %v1412_v45 = vrot.slane %v1262_v6, 4  ;;  %vm397_vm5 = vcmp.lt.s32.totalorder %v3656_v46, 0 }
 0x119   : > { %v475_v35 = vand.u32 2147483647, %v474_v21  ;;  %v1444_v14 = vsel %vm385_vm14, %v3899_v3, %v1400_v48  ;;  %vm1111_vm6 = vcmp.lt.s32.totalorder %v1110_v55, 2  ;;  %vm3977_vm7 = vcmp.le.f32.partialorder %v395_v22, 0.7853982 }
 0x11a   : > { %v3968_v62 = vmul.f32 %v1286_v31, %v1282_v19  ;;  %v1294_v37 = vsub.f32 %v1282_v19, %v3961_v60  ;;  %v1298_v38 = vadd.f32 %v1282_v19, %v3961_v60  ;;  %v481_v43 = vsub.s32 4, %v3878_v24 }
 0x11b   : > { %v478_v42 = vmul.f32 %v477_v36, %v475_v35  ;;  %vm1112_vm8 = vcmp.eq.s32.totalorder %v1110_v55, 0  ;;  %vm1115_vm9 = vcmp.eq.s32.totalorder %v1110_v55, 2  ;;  %v1424_v2 = vrot.slane %v1282_v19, 2 }
 0x11c   : > { %v3982_v44 = vmul.f32 %v1298_v38, %v1294_v37  ;;  %vm698_vm10 = vcmp.lt.s32.totalorder %v697_v33, 2  ;;  %v1448_v22 = vsel %vm1375_vm13, %v1444_v14, %v1412_v45  ;;  %vm699_vm11 = vcmp.eq.s32.totalorder %v697_v33, 0 }
 0x11d   : > { %v479_v15 = vxor.u32 2147483648, %v478_v42  ;;  %vm702_vm12 = vcmp.eq.s32.totalorder %v697_v33, 2  ;;  %v482_v50 = vsel %vm397_vm5, %v481_v43, %v3878_v24  ;;  %v1452_v23 = vsel %vm1380_vm0, %v1448_v22, %v1424_v2 }
 0x11e   : > { %v1314_v3 = vsub.f32 %v3982_v44, %v3968_v62  ;;  %v1318_v61 = vadd.f32 %v3982_v44, %v3968_v62  ;;  %vm695_vm15 = vweird.f32 %v3652_v41  ;;  %v484_v34 = vsel %vm3977_vm7, 0, %v482_v50 }
 0x11f   : > { %v3337_v28 = vpop.eup %3336  ;;  %v480_v30 = vsel %vm397_vm5, %v479_v15, %v478_v42  ;;  %v488_v13 = vadd.s32 3, %v484_v34  ;;  %v904_v11 = vand.u32 3, %v484_v34  ;;  %vm487_vm1 = vweird.f32 %v3656_v46 }
 0x120   : > { %v3339_v12 = vpop.eup %3338  ;;  %v703_v10 = vxor.u32 2147483648, %v3337_v28  ;;  %v483_v32 = vsel %vm3977_vm7, %v3656_v46, %v480_v30  ;;  %v1322_v26 = vmul.f32 %v1318_v61, %v1314_v3  ;;  %v1306_v38 = vmul.f32 2.0, %v3968_v62 }
 0x121   : > { %v700_v49 = vxor.u32 2147483648, %v3339_v12  ;;  %3340 = vcosq.f32 %v483_v32  ;;  %v489_v55 = vand.u32 3, %v488_v13  ;;  %vm905_vm4 = vcmp.lt.s32.totalorder %v904_v11, 2 }
 0x122   : > { %v704_v40 = vsel %vm702_vm12, %v703_v10, %v3339_v12  ;;  %v1117_v9 = vsel %vm1115_vm9, %v703_v10, %v3339_v12  ;;  %3342 = vsinq.f32 %v483_v32  ;;  %v1436_v5 = vrot.slane %v1322_v26, 6 }
 0x123   : > { %v701_v52 = vsel %vm699_vm11, %v3337_v28, %v700_v49  ;;  %v1114_v63 = vsel %vm1112_vm8, %v3337_v28, %v700_v49  ;;  %vm490_vm5 = vcmp.lt.s32.totalorder %v489_v55, 2  ;;  %vm909_vm7 = vcmp.eq.s32.totalorder %v904_v11, 2 }
 0x124   : > { %v705_v24 = vsel %vm698_vm10, %v701_v52, %v704_v40  ;;  %v1118_v53 = vsel %vm1111_vm6, %v1114_v63, %v1117_v9  ;;  %v1456_v56 = vsel %vm385_vm14, %v3982_v44, %v1436_v5  ;;  %vm906_vm6 = vcmp.eq.s32.totalorder %v904_v11, 0 }
 0x125   : > { %v4005_v29 = vsel %vm695_vm15, nan, %v705_v24  ;;  %v4007_v54 = vsel %vm695_vm15, nan, %v1118_v53  ;;  %v3106_v6 = vpack.c.bf16 %v1456_v56, %v1452_v23  ;;  %v1330_v43 = vrot.slane %v3905_v20, 6 }
 0x126   : > { %v1225_v57 = vmul.f32 2.0, %v4005_v29  ;;  %v1233_v59 = vsub.f32 %v4007_v54, %v4005_v29  ;;  %v1237_v7 = vadd.f32 %v4007_v54, %v4005_v29  ;;  %vm491_vm8 = vcmp.eq.s32.totalorder %v489_v55, 0 }
 0x127   : > { %3107 = vmatprep.subr.msk.bf16.mxu1 %vm3931_vm3, %v3106_v6  ;;  %vm494_vm9 = vcmp.eq.s32.totalorder %v489_v55, 2  ;;  %v1342_v2 = vrot.slane %v3943_v51, 4  ;;  %v1310_v49 = vmul.f32 %v1306_v38, %v3982_v44  ;;  %v1374_v51 = vsel %vm385_vm14, %v3862_v18, %v1330_v43 }
 0x128   : > { %v4017_v58 = vmul.f32 %v1225_v57, %v4007_v54  ;;  %v4019_v4 = vmul.f32 %v1237_v7, %v1233_v59  ;;  %v1354_v23 = vrot.slane %v3961_v60, 2  ;;  %vm390_vm10 = vcmask 1042432  }
 0x129   : > { %v1366_v53 = vrot.slane %v1310_v49, 6  ;;  %v1379_v34 = vsel %vm1375_vm13, %v1374_v51, %v1342_v2  ;;  %vm4105_vm11 = vmpackc.low %vm3439_vm2, %vm390_vm10  ;;  %v3440_v51 = vmov 0.0   ;;  %vm1494_vm2 = vcmask 392192  }
 0x12a   : > { %v1245_v25 = vmul.f32 2.0, %v4017_v58  ;;  %v1253_v21 = vsub.f32 %v4019_v4, %v4017_v58  ;;  %v1257_v48 = vadd.f32 %v4019_v4, %v4017_v58  ;;  %v1399_v60 = vrot.slane %v4019_v4, 6 }
 0x12b   : > { %v1384_v55 = vsel %vm1380_vm0, %v1379_v34, %v1354_v23 }
 0x12c   : > { %v4029_v19 = vmul.f32 %v1245_v25, %v4019_v4  ;;  %v4031_v31 = vmul.f32 %v1257_v48, %v1253_v21 }
 0x12e   : > { %v1265_v33 = vmul.f32 2.0, %v4029_v19  ;;  %v1273_v35 = vsub.f32 %v4031_v31, %v4029_v19  ;;  %v1277_v36 = vadd.f32 %v4031_v31, %v4029_v19  ;;  %v3341_v37 = vpop.eup %3340  ;;  %v1411_v6 = vrot.slane %v4031_v31, 4 }
 0x12f   : > { %v3343_v45 = vpop.eup %3342  ;;  %v495_v42 = vxor.u32 2147483648, %v3341_v37 }
 0x130   : > { %v4041_v14 = vmul.f32 %v1265_v33, %v4031_v31  ;;  %v1281_v39 = vmul.f32 %v1277_v36, %v1273_v35  ;;  %v492_v15 = vxor.u32 2147483648, %v3343_v45  ;;  %v1388_v33 = vsel %vm385_vm14, %v3968_v62, %v1366_v53 }
 0x131   : > { %v496_v28 = vsel %vm494_vm9, %v495_v42, %v3343_v45  ;;  %v911_v3 = vsel %vm909_vm7, %v495_v42, %v3343_v45  ;;  %v1329_v35 = vrot.slane %v4017_v58, 6  ;;  %v1443_v31 = vsel %vm385_vm14, %v4007_v54, %v1399_v60 }
 0x132   : > { %v1285_v61 = vmul.f32 2.0, %v4041_v14  ;;  %v1293_v22 = vsub.f32 %v1281_v39, %v4041_v14  ;;  %v493_v12 = vsel %vm491_vm8, %v3341_v37, %v492_v15  ;;  %v908_v10 = vsel %vm906_vm6, %v3341_v37, %v492_v15 }
 0x133   : > { %v1297_v30 = vadd.f32 %v1281_v39, %v4041_v14  ;;  %v497_v20 = vsel %vm490_vm5, %v493_v12, %v496_v28  ;;  %v912_v50 = vsel %vm905_vm4, %v908_v10, %v911_v3  ;;  %v1423_v21 = vrot.slane %v1281_v39, 2 }
 0x134   : > { %v1289_v32 = vmul.f32 %v1285_v61, %v1281_v39  ;;  %v4056_v26 = vsel %vm487_vm1, nan, %v497_v20  ;;  %v4060_v40 = vsel %vm487_vm1, nan, %v912_v50  ;;  %v1447_v38 = vsel %vm1375_vm13, %v1443_v31, %v1411_v6  ;;  %v3314_v31 = vld [vmem:[%s4611_s1 + $0x8] sm:$0xff]  }
 0x135   : > { %v1301_v9 = vmul.f32 %v1297_v30, %v1293_v22  ;;  %v1223_v44 = vmul.f32 2.0, %v4056_v26  ;;  %v1231_v52 = vsub.f32 %v4060_v40, %v4056_v26  ;;  %v1235_v63 = vadd.f32 %v4060_v40, %v4056_v26 }
 0x136   : > { %v1305_v18 = vmul.f32 2.0, %v1289_v32  ;;  %v1341_v42 = vrot.slane %v4029_v19, 4  ;;  %v1353_v39 = vrot.slane %v4041_v14, 2  ;;  %v1451_v15 = vsel %vm1380_vm0, %v1447_v38, %v1423_v21 }
 0x137   : > { %v1313_v5 = vsub.f32 %v1301_v9, %v1289_v32  ;;  %v1317_v24 = vadd.f32 %v1301_v9, %v1289_v32  ;;  %v4070_v56 = vmul.f32 %v1223_v44, %v4060_v40  ;;  %v1239_v57 = vmul.f32 %v1235_v63, %v1231_v52 }
 0x138   : > { %v1309_v59 = vmul.f32 %v1305_v18, %v1301_v9  ;;  %v3112_v28 = vpack.c.bf16 %v1388_v33, %v1384_v55  ;;  %v1373_v61 = vsel %vm385_vm14, %v4005_v29, %v1329_v35  ;;  %v389_v22 = vsel %vm385_vm14, %v3566_v1, 1.0 }
 0x139   : > { %v1321_v7 = vmul.f32 %v1317_v24, %v1313_v5  ;;  %v1243_v13 = vmul.f32 2.0, %v4070_v56  ;;  %v1251_v25 = vsub.f32 %v1239_v57, %v4070_v56  ;;  %v1255_v11 = vadd.f32 %v1239_v57, %v4070_v56 }
 0x13a   : > { %v1365_v37 = vrot.slane %v1309_v59, 6  ;;  %v1378_v14 = vsel %vm1375_vm13, %v1373_v61, %v1341_v42  ;;  %v388_v1 = vsel %vm385_vm14, %v3652_v41, 1.0  ;;  %v1397_v52 = vrot.slane %v1239_v57, 6 }
 0x13b   : > { %v1435_v48 = vrot.slane %v1321_v7, 6  ;;  %v4081_v4 = vmul.f32 %v1243_v13, %v1239_v57  ;;  %v1259_v36 = vmul.f32 %v1255_v11, %v1251_v25  ;;  %v1383_v49 = vsel %vm1380_vm0, %v1378_v14, %v1353_v39  ;;  %v3313_v57 = vld [vmem:[%s4611_s1] sm:$0xff]  }
 0x13c   : > { %v1387_v19 = vsel %vm385_vm14, %v1289_v32, %v1365_v37  ;;  %v3121_v5 = vpack.c.bf16 %v3440_v51, %v388_v1  ;;  %v1441_v41 = vsel %vm385_vm14, %v4060_v40, %v1397_v52  ;;  %v1327_v59 = vrot.slane %v4070_v56, 6 }
 0x13d   : > { %v1455_v45 = vsel %vm385_vm14, %v1301_v9, %v1435_v48  ;;  %v1263_v43 = vmul.f32 2.0, %v4081_v4  ;;  %v1271_v62 = vsub.f32 %v1259_v36, %v4081_v4  ;;  %v1275_v58 = vadd.f32 %v1259_v36, %v4081_v4 }
 0x13e   : > { %v3109_v2 = vpack.c.bf16 %v1455_v45, %v1451_v15  ;;  %v3115_v20 = vpack.c.bf16 %v1387_v19, %v1383_v49  ;;  %v3118_v9 = vpack.c.bf16 %v3440_v51, %v389_v22  ;;  %v1409_v18 = vrot.slane %v1259_v36, 4 }
 0x13f   : > { %v1267_v54 = vmul.f32 %v1263_v43, %v1259_v36  ;;  %v1279_v3 = vmul.f32 %v1275_v58, %v1271_v62  ;;  %v1339_v13 = vrot.slane %v4081_v4, 4  ;;  %v1371_v56 = vsel %vm385_vm14, %v4056_v26, %v1327_v59 }
 0x140   : > { %3110 = vmatpush1.bf16.msk.msra.mxu1 %vm3931_vm3, %v3109_v2  ;;  %v1445_v6 = vsel %vm1375_vm13, %v1441_v41, %v1409_v18  ;;  %v387_v33 = vsel %vm385_vm14, %v3564_v0, 1.0  ;;  %v386_v36 = vsel %vm385_vm14, %v3656_v46, 1.0  ;;  %v3315_v46 = vld [vmem:[%s4611_s1 + $0x10] sm:$0xff]  }
 0x141   : > { %v1283_v12 = vmul.f32 2.0, %v1267_v54  ;;  %v1291_v10 = vsub.f32 %v1279_v3, %v1267_v54  ;;  %v1295_v30 = vadd.f32 %v1279_v3, %v1267_v54  ;;  %3113 = vmatprep.subr.msk.bf16.mxu1 %vm3931_vm3, %v3112_v28  ;;  %v1421_v53 = vrot.slane %v1279_v3, 2 }
 0x142   : > { %v1351_v21 = vrot.slane %v1267_v54, 2  ;;  %v1376_v55 = vsel %vm1375_vm13, %v1371_v56, %v1339_v13  ;;  %v3097_v26 = vpack.c.bf16 %v3440_v51, %v387_v33  ;;  %v3100_v0 = vpack.c.bf16 %v3440_v51, %v386_v36  ;;  %v3317_v36 = vld [vmem:[%s4612_s2 + $0x8] sm:$0xff]  }
 0x143   : > { %v1287_v50 = vmul.f32 %v1283_v12, %v1279_v3  ;;  %v1299_v32 = vmul.f32 %v1295_v30, %v1291_v10  ;;  %v1449_v25 = vsel %vm1380_vm0, %v1445_v6, %v1421_v53  ;;  %v3316_v6 = vld [vmem:[%s4612_s2] sm:$0xff]   ;;  %vm2509_vm13 = vcmask 23552  }
 0x144   : > { %3116 = vmatpush1.bf16.msk.msra.mxu1 %vm3931_vm3, %v3115_v20  ;;  %v1381_v35 = vsel %vm1380_vm0, %v1376_v55, %v1351_v21 }
 0x145   : > { %v1311_v23 = vsub.f32 %v1299_v32, %v1287_v50  ;;  %v1315_v44 = vadd.f32 %v1299_v32, %v1287_v50  ;;  %v1303_v63 = vmul.f32 2.0, %v1287_v50  ;;  %3119 = vmatprep.subr.msk.bf16.mxu1 %vm4105_vm11, %v3118_v9 }
 0x147   : > { %v1319_v24 = vmul.f32 %v1315_v44, %v1311_v23  ;;  %v1307_v34 = vmul.f32 %v1303_v63, %v1299_v32 }
 0x148   : > { %3122 = vmatpush1.bf16.msk.msra.mxu1 %vm4105_vm11, %v3121_v5 }
 0x149   : > { %v1433_v60 = vrot.slane %v1319_v24, 6  ;;  %v1363_v7 = vrot.slane %v1307_v34, 6 }
 0x14b   : > { %v1453_v11 = vsel %vm385_vm14, %v1299_v32, %v1433_v60  ;;  %3123 = vmatmul.mubr.msk.bf16.vlgmr.msra.gmra.mxu1 %vm1494_vm2, %v3313_v57  ;;  %v1385_v48 = vsel %vm385_vm14, %v1287_v50, %v1363_v7 }
 0x14c   : > { %v3088_v40 = vpack.c.bf16 %v1453_v11, %v1449_v25  ;;  %1609 = vmatprep.mubr.bf16.mxu1 %v3438_v8  ;;  %v3094_v4 = vpack.c.bf16 %v1385_v48, %v1381_v35 }
 0x14e   : > { %3089 = vmatpush1.bf16.msk.msra.mxu0 %vm3931_vm3, %v3088_v40 }
 0x14f   : > { %3092 = vmatprep.subr.msk.bf16.mxu0 %vm3931_vm3, %v3091_v27 }
 0x152   : > { %3095 = vmatpush1.bf16.msk.msra.mxu0 %vm3931_vm3, %v3094_v4 }
 0x153   : > { %3098 = vmatprep.subr.msk.bf16.mxu0 %vm4105_vm11, %v3097_v26  ;;  %3124 = vmatmul.mubr.msk.bf16.gmra.mxu1 %vm1494_vm2, %v3314_v31 }
 0x154   : > { %1619 = vmatprep.mubr.bf16.mxu1 %v3438_v8 }
 0x156   : > { %3101 = vmatpush1.bf16.msk.msra.mxu0 %vm4105_vm11, %v3100_v0 }
 0x159   : > { %3102 = vmatmul.mubr.msk.bf16.vlgmr.msra.gmra.mxu0 %vm1494_vm2, %v3313_v57 }
 0x15a   : > { %1546 = vmatprep.mubr.bf16.mxu0 %v3438_v8 }
 0x15b   : > { %3125 = vmatmul.mubr.msk.bf16.gmra.mxu1 %vm1494_vm2, %v3315_v46 }
 0x15c   : > { %1791 = vmatprep.mubr.bf16.mxu1 %v3438_v8 }
 0x161   : > { %3103 = vmatmul.mubr.msk.bf16.gmra.mxu0 %vm1494_vm2, %v3314_v31 }
 0x162   : > { %1556 = vmatprep.mubr.bf16.mxu0 %v3438_v8 }
 0x169   : > { %3104 = vmatmul.mubr.msk.bf16.gmra.mxu0 %vm1494_vm2, %v3315_v46  ;;  %v3318_v46 = vld [vmem:[%s4612_s2 + $0x10] sm:$0xff]  }
 0x16a   : > { %1728 = vmatprep.mubr.bf16.mxu0 %v3438_v8 }
 0x20b   : > { %v1601_v47 = vpop.f32.mrf.mxu1 }
 0x20c   : > { %v1632_v44 = vmax.f32 %v1601_v47, 0.0 }
 0x20d   : > { %v1603_v17 = vpop.f32.mrf.mxu1 }
 0x20e   : > { %v1633_v50 = vmax.f32 %v1603_v17, 0.0 }
 0x20f   : > { %v1605_v16 = vpop.f32.mrf.mxu1 }
 0x210   : > { %v1636_v52 = vmax.f32 %v1605_v16, 0.0 }
 0x211   : > { %v1607_v27 = vpop.f32.mrf.mxu1 }
 0x212   : > { %v1637_v32 = vmax.f32 %v1607_v27, 0.0  ;;  %v1656_v53 = vpack.c.bf16 %v1636_v52, %v1632_v44 }
 0x213   : > { %v1611_v37 = vpop.f32.mrf.mxu1 }
 0x214   : > { %v1640_v49 = vmax.f32 %v1611_v37, 0.0  ;;  %v1657_v18 = vpack.c.bf16 %v1637_v32, %v1633_v50 }
 0x215   : > { %v1613_v38 = vpop.f32.mrf.mxu1 }
 0x216   : > { %v1641_v3 = vmax.f32 %v1613_v38, 0.0 }
 0x217   : > { %v1615_v45 = vpop.f32.mrf.mxu1 }
 0x218   : > { %v1644_v20 = vmax.f32 %v1615_v45, 0.0 }
 0x219   : > { %v4167_v42 = vpop.f32.mrf.mxu0  ;;  %v1617_v39 = vpop.f32.mrf.mxu1 }
 0x21a   : > { %v1645_v61 = vmax.f32 %v1617_v39, 0.0  ;;  %v1660_v63 = vpack.c.bf16 %v1644_v20, %v1640_v49  ;;  %v1630_v31 = vmax.f32 %v4167_v42, 0.0 }
 0x21b   : > { %v1540_v43 = vpop.f32.mrf.mxu0  ;;  %v1621_v62 = vpop.f32.mrf.mxu1 }
 0x21c   : > { %v1648_v28 = vmax.f32 %v1621_v62, 0.0  ;;  %v1661_v51 = vpack.c.bf16 %v1645_v61, %v1641_v3  ;;  %v1631_v33 = vmax.f32 %v1540_v43, 0.0 }
 0x21d   : > { %v4169_v58 = vpop.f32.mrf.mxu0  ;;  %v1623_v15 = vpop.f32.mrf.mxu1 }
 0x21e   : > { %v1649_v19 = vmax.f32 %v1623_v15, 0.0  ;;  %v1634_v35 = vmax.f32 %v4169_v58, 0.0 }
 0x21f   : > { %v1544_v2 = vpop.f32.mrf.mxu0  ;;  %v1625_v54 = vpop.f32.mrf.mxu1 }
 0x220   : > { %v1652_v14 = vmax.f32 %v1625_v54, 0.0  ;;  %v1635_v56 = vmax.f32 %v1544_v2, 0.0  ;;  %v1654_v0 = vpack.c.bf16 %v1634_v35, %v1630_v31 }
 0x221   : > { %v1548_v22 = vpop.f32.mrf.mxu0  ;;  %v1627_v12 = vpop.f32.mrf.mxu1 }
 0x222   : > { %v1653_v10 = vmax.f32 %v1627_v12, 0.0  ;;  %v1664_v29 = vpack.c.bf16 %v1652_v14, %v1648_v28  ;;  %v1638_v55 = vmax.f32 %v1548_v22, 0.0  ;;  %v1655_v26 = vpack.c.bf16 %v1635_v56, %v1631_v33 }
 0x223   : > { %v1550_v30 = vpop.f32.mrf.mxu0 }
 0x224   : > { %v1665_v9 = vpack.c.bf16 %v1653_v10, %v1649_v19  ;;  %v1639_v25 = vmax.f32 %v1550_v30, 0.0 }
 0x225   : > { %v1552_v1 = vpop.f32.mrf.mxu0 }
 0x226   : > { %1769 = vmatprep.subr.bf16.mxu1 %v1665_v9  ;;  %v1642_v21 = vmax.f32 %v1552_v1, 0.0 }
 0x227   : > { %v1554_v23 = vpop.f32.mrf.mxu0  ;;  %1770 = vmatpush1.bf16.msra.mxu1 %v1664_v29 }
 0x228   : > { %1771 = vmatprep.subr.bf16.mxu1 %v1661_v51  ;;  %v1643_v59 = vmax.f32 %v1554_v23, 0.0  ;;  %v1658_v4 = vpack.c.bf16 %v1642_v21, %v1638_v55 }
 0x229   : > { %v1558_v5 = vpop.f32.mrf.mxu0 }
 0x22a   : > { %v1646_v13 = vmax.f32 %v1558_v5, 0.0  ;;  %v1659_v48 = vpack.c.bf16 %v1643_v59, %v1639_v25 }
 0x22b   : > { %v1560_v24 = vpop.f32.mrf.mxu0  ;;  %1772 = vmatpush1.bf16.msra.mxu1 %v1660_v63 }
 0x22c   : > { %1773 = vmatprep.subr.bf16.mxu1 %v1657_v18  ;;  %v1647_v7 = vmax.f32 %v1560_v24, 0.0 }
 0x22d   : > { %v1562_v34 = vpop.f32.mrf.mxu0 }
 0x22e   : > { %v1650_v60 = vmax.f32 %v1562_v34, 0.0 }
 0x22f   : > { %v1564_v41 = vpop.f32.mrf.mxu0  ;;  %1774 = vmatpush1.bf16.msra.mxu1 %v1656_v53 }
 0x230   : > { %v1651_v57 = vmax.f32 %v1564_v41, 0.0  ;;  %v1662_v40 = vpack.c.bf16 %v1650_v60, %v1646_v13 }
 0x232   : > { %v1663_v11 = vpack.c.bf16 %v1651_v57, %v1647_v7  ;;  %3132 = vmatmul.mubr.msk.bf16.vlgmr.msra.gmra.mxu1 %vm1494_vm2, %v3316_v6 }
 0x233   : > { %1801 = vmatprep.mubr.bf16.mxu1 %v3438_v8 }
 0x234   : > { %1706 = vmatprep.subr.bf16.mxu0 %v1663_v11 }
 0x235   : > { %1707 = vmatpush1.bf16.msra.mxu0 %v1662_v40 }
 0x236   : > { %1708 = vmatprep.subr.bf16.mxu0 %v1659_v48 }
 0x239   : > { %1709 = vmatpush1.bf16.msra.mxu0 %v1658_v4 }
 0x23a   : > { %1710 = vmatprep.subr.bf16.mxu0 %v1655_v26  ;;  %3133 = vmatmul.mubr.msk.bf16.gmra.mxu1 %vm1494_vm2, %v3317_v36 }
 0x23b   : > { %1811 = vmatprep.mubr.bf16.mxu1 %v3438_v8 }
 0x23d   : > { %1711 = vmatpush1.bf16.msra.mxu0 %v1654_v0 }
 0x240   : > { %3129 = vmatmul.mubr.msk.bf16.vlgmr.msra.gmra.mxu0 %vm1494_vm2, %v3316_v6  ;;  %v3319_v6 = vld [vmem:[%s4612_s2 + $0x18] sm:$0xff]  }
 0x241   : > { %1738 = vmatprep.mubr.bf16.mxu0 %v3438_v8 }
 0x242   : > { %3134 = vmatmul.mubr.msk.bf16.gmra.mxu1 %vm1494_vm2, %v3318_v46 }
 0x243   : > { %1984 = vmatprep.mubr.bf16.mxu1 %v3438_v8 }
 0x248   : > { %3130 = vmatmul.mubr.msk.bf16.gmra.mxu0 %vm1494_vm2, %v3317_v36  ;;  %v3320_v36 = vld [vmem:[%s4612_s2 + $0x20] sm:$0xff]  }
 0x249   : > { %1748 = vmatprep.mubr.bf16.mxu0 %v3438_v8 }
 0x250   : > { %3131 = vmatmul.mubr.msk.bf16.gmra.mxu0 %vm1494_vm2, %v3318_v46  ;;  %v3321_v46 = vld [vmem:[%s4612_s2 + $0x28] sm:$0xff]  }
 0x251   : > { %1921 = vmatprep.mubr.bf16.mxu0 %v3438_v8 }
 0x2f2   : > { %v1793_v47 = vpop.f32.mrf.mxu1 }
 0x2f3   : > { %v1824_v44 = vmax.f32 %v1793_v47, 0.0 }
 0x2f4   : > { %v1795_v17 = vpop.f32.mrf.mxu1 }
 0x2f5   : > { %v1825_v50 = vmax.f32 %v1795_v17, 0.0 }
 0x2f6   : > { %v1797_v16 = vpop.f32.mrf.mxu1 }
 0x2f7   : > { %v1828_v52 = vmax.f32 %v1797_v16, 0.0 }
 0x2f8   : > { %v1799_v27 = vpop.f32.mrf.mxu1 }
 0x2f9   : > { %v1829_v32 = vmax.f32 %v1799_v27, 0.0  ;;  %v1848_v53 = vpack.c.bf16 %v1828_v52, %v1824_v44 }
 0x2fa   : > { %v1803_v37 = vpop.f32.mrf.mxu1 }
 0x2fb   : > { %v1832_v49 = vmax.f32 %v1803_v37, 0.0  ;;  %v1849_v18 = vpack.c.bf16 %v1829_v32, %v1825_v50 }
 0x2fc   : > { %v1805_v38 = vpop.f32.mrf.mxu1 }
 0x2fd   : > { %v1833_v3 = vmax.f32 %v1805_v38, 0.0 }
 0x2fe   : > { %v1807_v45 = vpop.f32.mrf.mxu1 }
 0x2ff   : > { %v1836_v20 = vmax.f32 %v1807_v45, 0.0 }
 0x300   : > { %v4194_v42 = vpop.f32.mrf.mxu0  ;;  %v1809_v39 = vpop.f32.mrf.mxu1 }
 0x301   : > { %v1837_v61 = vmax.f32 %v1809_v39, 0.0  ;;  %v1852_v63 = vpack.c.bf16 %v1836_v20, %v1832_v49  ;;  %v1822_v31 = vmax.f32 %v4194_v42, 0.0 }
 0x302   : > { %v1732_v43 = vpop.f32.mrf.mxu0  ;;  %v1813_v62 = vpop.f32.mrf.mxu1 }
 0x303   : > { %v1840_v28 = vmax.f32 %v1813_v62, 0.0  ;;  %v1853_v51 = vpack.c.bf16 %v1837_v61, %v1833_v3  ;;  %v1823_v33 = vmax.f32 %v1732_v43, 0.0 }
 0x304   : > { %v4196_v58 = vpop.f32.mrf.mxu0  ;;  %v1815_v15 = vpop.f32.mrf.mxu1 }
 0x305   : > { %v1841_v19 = vmax.f32 %v1815_v15, 0.0  ;;  %v1826_v35 = vmax.f32 %v4196_v58, 0.0 }
 0x306   : > { %v1736_v2 = vpop.f32.mrf.mxu0  ;;  %v1817_v54 = vpop.f32.mrf.mxu1 }
 0x307   : > { %v1844_v14 = vmax.f32 %v1817_v54, 0.0  ;;  %v1827_v56 = vmax.f32 %v1736_v2, 0.0  ;;  %v1846_v0 = vpack.c.bf16 %v1826_v35, %v1822_v31 }
 0x308   : > { %v1740_v22 = vpop.f32.mrf.mxu0  ;;  %v1819_v12 = vpop.f32.mrf.mxu1 }
 0x309   : > { %v1845_v10 = vmax.f32 %v1819_v12, 0.0  ;;  %v1856_v29 = vpack.c.bf16 %v1844_v14, %v1840_v28  ;;  %v1830_v55 = vmax.f32 %v1740_v22, 0.0  ;;  %v1847_v26 = vpack.c.bf16 %v1827_v56, %v1823_v33 }
 0x30a   : > { %v1742_v30 = vpop.f32.mrf.mxu0 }
 0x30b   : > { %v1857_v9 = vpack.c.bf16 %v1845_v10, %v1841_v19  ;;  %v1831_v25 = vmax.f32 %v1742_v30, 0.0 }
 0x30c   : > { %v1744_v1 = vpop.f32.mrf.mxu0 }
 0x30d   : > { %1962 = vmatprep.subr.bf16.mxu1 %v1857_v9  ;;  %v1834_v21 = vmax.f32 %v1744_v1, 0.0 }
 0x30e   : > { %v1746_v23 = vpop.f32.mrf.mxu0  ;;  %1963 = vmatpush1.bf16.msra.mxu1 %v1856_v29 }
 0x30f   : > { %1964 = vmatprep.subr.bf16.mxu1 %v1853_v51  ;;  %v1835_v59 = vmax.f32 %v1746_v23, 0.0  ;;  %v1850_v4 = vpack.c.bf16 %v1834_v21, %v1830_v55 }
 0x310   : > { %v1750_v5 = vpop.f32.mrf.mxu0 }
 0x311   : > { %v1838_v13 = vmax.f32 %v1750_v5, 0.0  ;;  %v1851_v48 = vpack.c.bf16 %v1835_v59, %v1831_v25 }
 0x312   : > { %v1752_v24 = vpop.f32.mrf.mxu0  ;;  %1965 = vmatpush1.bf16.msra.mxu1 %v1852_v63 }
 0x313   : > { %1966 = vmatprep.subr.bf16.mxu1 %v1849_v18  ;;  %v1839_v7 = vmax.f32 %v1752_v24, 0.0 }
 0x314   : > { %v1754_v34 = vpop.f32.mrf.mxu0 }
 0x315   : > { %v1842_v60 = vmax.f32 %v1754_v34, 0.0 }
 0x316   : > { %v1756_v41 = vpop.f32.mrf.mxu0  ;;  %1967 = vmatpush1.bf16.msra.mxu1 %v1848_v53 }
 0x317   : > { %v1843_v57 = vmax.f32 %v1756_v41, 0.0  ;;  %v1854_v40 = vpack.c.bf16 %v1842_v60, %v1838_v13 }
 0x319   : > { %v1855_v11 = vpack.c.bf16 %v1843_v57, %v1839_v7  ;;  %3147 = vmatmul.mubr.msk.bf16.vlgmr.msra.gmra.mxu1 %vm1494_vm2, %v3319_v6 }
 0x31a   : > { %1994 = vmatprep.mubr.bf16.mxu1 %v3438_v8 }
 0x31b   : > { %1899 = vmatprep.subr.bf16.mxu0 %v1855_v11 }
 0x31c   : > { %1900 = vmatpush1.bf16.msra.mxu0 %v1854_v40 }
 0x31d   : > { %1901 = vmatprep.subr.bf16.mxu0 %v1851_v48 }
 0x320   : > { %1902 = vmatpush1.bf16.msra.mxu0 %v1850_v4 }
 0x321   : > { %1903 = vmatprep.subr.bf16.mxu0 %v1847_v26  ;;  %3148 = vmatmul.mubr.msk.bf16.gmra.mxu1 %vm1494_vm2, %v3320_v36 }
 0x322   : > { %2004 = vmatprep.mubr.bf16.mxu1 %v3438_v8 }
 0x324   : > { %1904 = vmatpush1.bf16.msra.mxu0 %v1846_v0 }
 0x327   : > { %3144 = vmatmul.mubr.msk.bf16.vlgmr.msra.gmra.mxu0 %vm1494_vm2, %v3319_v6  ;;  %v3322_v6 = vld [vmem:[%s4612_s2 + $0x30] sm:$0xff]  }
 0x328   : > { %1931 = vmatprep.mubr.bf16.mxu0 %v3438_v8 }
 0x329   : > { %3149 = vmatmul.mubr.msk.bf16.gmra.mxu1 %vm1494_vm2, %v3321_v46 }
 0x32a   : > { %2177 = vmatprep.mubr.bf16.mxu1 %v3438_v8 }
 0x32f   : > { %3145 = vmatmul.mubr.msk.bf16.gmra.mxu0 %vm1494_vm2, %v3320_v36  ;;  %v3323_v36 = vld [vmem:[%s4612_s2 + $0x38] sm:$0xff]  }
 0x330   : > { %1941 = vmatprep.mubr.bf16.mxu0 %v3438_v8 }
 0x337   : > { %3146 = vmatmul.mubr.msk.bf16.gmra.mxu0 %vm1494_vm2, %v3321_v46  ;;  %v3324_v46 = vld [vmem:[%s4612_s2 + $0x40] sm:$0xff]  }
 0x338   : > { %2114 = vmatprep.mubr.bf16.mxu0 %v3438_v8 }
 0x3d9   : > { %v1986_v47 = vpop.f32.mrf.mxu1 }
 0x3da   : > { %v2017_v44 = vmax.f32 %v1986_v47, 0.0 }
 0x3db   : > { %v1988_v17 = vpop.f32.mrf.mxu1 }
 0x3dc   : > { %v2018_v50 = vmax.f32 %v1988_v17, 0.0 }
 0x3dd   : > { %v1990_v16 = vpop.f32.mrf.mxu1 }
 0x3de   : > { %v2021_v52 = vmax.f32 %v1990_v16, 0.0 }
 0x3df   : > { %v1992_v27 = vpop.f32.mrf.mxu1 }
 0x3e0   : > { %v2022_v32 = vmax.f32 %v1992_v27, 0.0  ;;  %v2041_v53 = vpack.c.bf16 %v2021_v52, %v2017_v44 }
 0x3e1   : > { %v1996_v37 = vpop.f32.mrf.mxu1 }
 0x3e2   : > { %v2025_v49 = vmax.f32 %v1996_v37, 0.0  ;;  %v2042_v18 = vpack.c.bf16 %v2022_v32, %v2018_v50 }
 0x3e3   : > { %v1998_v38 = vpop.f32.mrf.mxu1 }
 0x3e4   : > { %v2026_v3 = vmax.f32 %v1998_v38, 0.0 }
 0x3e5   : > { %v2000_v45 = vpop.f32.mrf.mxu1 }
 0x3e6   : > { %v2029_v20 = vmax.f32 %v2000_v45, 0.0 }
 0x3e7   : > { %v4221_v42 = vpop.f32.mrf.mxu0  ;;  %v2002_v39 = vpop.f32.mrf.mxu1 }
 0x3e8   : > { %v2030_v61 = vmax.f32 %v2002_v39, 0.0  ;;  %v2045_v63 = vpack.c.bf16 %v2029_v20, %v2025_v49  ;;  %v2015_v31 = vmax.f32 %v4221_v42, 0.0 }
 0x3e9   : > { %v1925_v43 = vpop.f32.mrf.mxu0  ;;  %v2006_v62 = vpop.f32.mrf.mxu1 }
 0x3ea   : > { %v2033_v28 = vmax.f32 %v2006_v62, 0.0  ;;  %v2046_v51 = vpack.c.bf16 %v2030_v61, %v2026_v3  ;;  %v2016_v33 = vmax.f32 %v1925_v43, 0.0 }
 0x3eb   : > { %v4223_v58 = vpop.f32.mrf.mxu0  ;;  %v2008_v15 = vpop.f32.mrf.mxu1 }
 0x3ec   : > { %v2034_v19 = vmax.f32 %v2008_v15, 0.0  ;;  %v2019_v35 = vmax.f32 %v4223_v58, 0.0 }
 0x3ed   : > { %v1929_v2 = vpop.f32.mrf.mxu0  ;;  %v2010_v54 = vpop.f32.mrf.mxu1 }
 0x3ee   : > { %v2037_v14 = vmax.f32 %v2010_v54, 0.0  ;;  %v2020_v56 = vmax.f32 %v1929_v2, 0.0  ;;  %v2039_v0 = vpack.c.bf16 %v2019_v35, %v2015_v31 }
 0x3ef   : > { %v1933_v22 = vpop.f32.mrf.mxu0  ;;  %v2012_v12 = vpop.f32.mrf.mxu1 }
 0x3f0   : > { %v2038_v10 = vmax.f32 %v2012_v12, 0.0  ;;  %v2049_v29 = vpack.c.bf16 %v2037_v14, %v2033_v28  ;;  %v2023_v55 = vmax.f32 %v1933_v22, 0.0  ;;  %v2040_v26 = vpack.c.bf16 %v2020_v56, %v2016_v33 }
 0x3f1   : > { %v1935_v30 = vpop.f32.mrf.mxu0 }
 0x3f2   : > { %v2050_v9 = vpack.c.bf16 %v2038_v10, %v2034_v19  ;;  %v2024_v25 = vmax.f32 %v1935_v30, 0.0 }
 0x3f3   : > { %v1937_v1 = vpop.f32.mrf.mxu0 }
 0x3f4   : > { %2155 = vmatprep.subr.bf16.mxu1 %v2050_v9  ;;  %v2027_v21 = vmax.f32 %v1937_v1, 0.0 }
 0x3f5   : > { %v1939_v23 = vpop.f32.mrf.mxu0  ;;  %2156 = vmatpush1.bf16.msra.mxu1 %v2049_v29 }
 0x3f6   : > { %2157 = vmatprep.subr.bf16.mxu1 %v2046_v51  ;;  %v2028_v59 = vmax.f32 %v1939_v23, 0.0  ;;  %v2043_v4 = vpack.c.bf16 %v2027_v21, %v2023_v55 }
 0x3f7   : > { %v1943_v5 = vpop.f32.mrf.mxu0 }
 0x3f8   : > { %v2031_v13 = vmax.f32 %v1943_v5, 0.0  ;;  %v2044_v48 = vpack.c.bf16 %v2028_v59, %v2024_v25 }
 0x3f9   : > { %v1945_v24 = vpop.f32.mrf.mxu0  ;;  %2158 = vmatpush1.bf16.msra.mxu1 %v2045_v63 }
 0x3fa   : > { %2159 = vmatprep.subr.bf16.mxu1 %v2042_v18  ;;  %v2032_v7 = vmax.f32 %v1945_v24, 0.0 }
 0x3fb   : > { %v1947_v34 = vpop.f32.mrf.mxu0 }
 0x3fc   : > { %v2035_v60 = vmax.f32 %v1947_v34, 0.0 }
 0x3fd   : > { %v1949_v41 = vpop.f32.mrf.mxu0  ;;  %2160 = vmatpush1.bf16.msra.mxu1 %v2041_v53 }
 0x3fe   : > { %v2036_v57 = vmax.f32 %v1949_v41, 0.0  ;;  %v2047_v40 = vpack.c.bf16 %v2035_v60, %v2031_v13 }
 0x400   : > { %v2048_v11 = vpack.c.bf16 %v2036_v57, %v2032_v7  ;;  %3162 = vmatmul.mubr.msk.bf16.vlgmr.msra.gmra.mxu1 %vm1494_vm2, %v3322_v6 }
 0x401   : > { %2187 = vmatprep.mubr.bf16.mxu1 %v3438_v8 }
 0x402   : > { %2092 = vmatprep.subr.bf16.mxu0 %v2048_v11 }
 0x403   : > { %2093 = vmatpush1.bf16.msra.mxu0 %v2047_v40 }
 0x404   : > { %2094 = vmatprep.subr.bf16.mxu0 %v2044_v48 }
 0x407   : > { %2095 = vmatpush1.bf16.msra.mxu0 %v2043_v4 }
 0x408   : > { %2096 = vmatprep.subr.bf16.mxu0 %v2040_v26  ;;  %3163 = vmatmul.mubr.msk.bf16.gmra.mxu1 %vm1494_vm2, %v3323_v36 }
 0x409   : > { %2197 = vmatprep.mubr.bf16.mxu1 %v3438_v8 }
 0x40b   : > { %2097 = vmatpush1.bf16.msra.mxu0 %v2039_v0  ;;  %v3326_v0 = vld [vmem:[%s4612_s2 + $0x50] sm:$0xff]  }
 0x40e   : > { %3159 = vmatmul.mubr.msk.bf16.vlgmr.msra.gmra.mxu0 %vm1494_vm2, %v3322_v6  ;;  %v3325_v6 = vld [vmem:[%s4612_s2 + $0x48] sm:$0xff]  }
 0x40f   : > { %2124 = vmatprep.mubr.bf16.mxu0 %v3438_v8 }
 0x410   : > { %3164 = vmatmul.mubr.msk.bf16.gmra.mxu1 %vm1494_vm2, %v3324_v46 }
 0x411   : > { %2360 = vmatprep.mubr.bf16.mxu1 %v3438_v8 }
 0x416   : > { %3160 = vmatmul.mubr.msk.bf16.gmra.mxu0 %vm1494_vm2, %v3323_v36 }
 0x417   : > { %2134 = vmatprep.mubr.bf16.mxu0 %v3438_v8 }
 0x41e   : > { %3161 = vmatmul.mubr.msk.bf16.gmra.mxu0 %vm1494_vm2, %v3324_v46  ;;  %v3327_v46 = vld [vmem:[%s4612_s2 + $0x58] sm:$0xff]  }
 0x41f   : > { %2307 = vmatprep.mubr.bf16.mxu0 %v3438_v8 }
 0x4c0   : > { %v2179_v47 = vpop.f32.mrf.mxu1 }
 0x4c1   : > { %v2210_v44 = vmax.f32 %v2179_v47, 0.0 }
 0x4c2   : > { %v2181_v17 = vpop.f32.mrf.mxu1 }
 0x4c3   : > { %v2211_v50 = vmax.f32 %v2181_v17, 0.0 }
 0x4c4   : > { %v2183_v16 = vpop.f32.mrf.mxu1 }
 0x4c5   : > { %v2214_v52 = vmax.f32 %v2183_v16, 0.0 }
 0x4c6   : > { %v2185_v27 = vpop.f32.mrf.mxu1 }
 0x4c7   : > { %v2215_v32 = vmax.f32 %v2185_v27, 0.0  ;;  %v2234_v53 = vpack.c.bf16 %v2214_v52, %v2210_v44 }
 0x4c8   : > { %v2189_v37 = vpop.f32.mrf.mxu1 }
 0x4c9   : > { %v2218_v49 = vmax.f32 %v2189_v37, 0.0  ;;  %v2235_v18 = vpack.c.bf16 %v2215_v32, %v2211_v50 }
 0x4ca   : > { %v2191_v38 = vpop.f32.mrf.mxu1 }
 0x4cb   : > { %v2219_v3 = vmax.f32 %v2191_v38, 0.0 }
 0x4cc   : > { %v2193_v45 = vpop.f32.mrf.mxu1 }
 0x4cd   : > { %v2222_v20 = vmax.f32 %v2193_v45, 0.0 }
 0x4ce   : > { %v4248_v42 = vpop.f32.mrf.mxu0  ;;  %v2195_v39 = vpop.f32.mrf.mxu1 }
 0x4cf   : > { %v2223_v61 = vmax.f32 %v2195_v39, 0.0  ;;  %v2238_v63 = vpack.c.bf16 %v2222_v20, %v2218_v49  ;;  %v2208_v36 = vmax.f32 %v4248_v42, 0.0 }
 0x4d0   : > { %v2118_v43 = vpop.f32.mrf.mxu0  ;;  %v2199_v62 = vpop.f32.mrf.mxu1 }
 0x4d1   : > { %v2226_v28 = vmax.f32 %v2199_v62, 0.0  ;;  %v2239_v51 = vpack.c.bf16 %v2223_v61, %v2219_v3  ;;  %v2209_v33 = vmax.f32 %v2118_v43, 0.0 }
 0x4d2   : > { %v4250_v58 = vpop.f32.mrf.mxu0  ;;  %v2201_v15 = vpop.f32.mrf.mxu1 }
 0x4d3   : > { %v2227_v19 = vmax.f32 %v2201_v15, 0.0  ;;  %v2212_v35 = vmax.f32 %v4250_v58, 0.0 }
 0x4d4   : > { %v2122_v2 = vpop.f32.mrf.mxu0  ;;  %v2203_v54 = vpop.f32.mrf.mxu1 }
 0x4d5   : > { %v2230_v14 = vmax.f32 %v2203_v54, 0.0  ;;  %v2213_v56 = vmax.f32 %v2122_v2, 0.0  ;;  %v2232_v31 = vpack.c.bf16 %v2212_v35, %v2208_v36 }
 0x4d6   : > { %v2126_v22 = vpop.f32.mrf.mxu0  ;;  %v2205_v12 = vpop.f32.mrf.mxu1 }
 0x4d7   : > { %v2231_v10 = vmax.f32 %v2205_v12, 0.0  ;;  %v2242_v29 = vpack.c.bf16 %v2230_v14, %v2226_v28  ;;  %v2216_v55 = vmax.f32 %v2126_v22, 0.0  ;;  %v2233_v26 = vpack.c.bf16 %v2213_v56, %v2209_v33 }
 0x4d8   : > { %v2128_v30 = vpop.f32.mrf.mxu0 }
 0x4d9   : > { %v2243_v9 = vpack.c.bf16 %v2231_v10, %v2227_v19  ;;  %v2217_v25 = vmax.f32 %v2128_v30, 0.0 }
 0x4da   : > { %v2130_v1 = vpop.f32.mrf.mxu0 }
 0x4db   : > { %2338 = vmatprep.subr.bf16.mxu1 %v2243_v9  ;;  %v2220_v21 = vmax.f32 %v2130_v1, 0.0 }
 0x4dc   : > { %v2132_v23 = vpop.f32.mrf.mxu0  ;;  %2339 = vmatpush1.bf16.msra.mxu1 %v2242_v29 }
 0x4dd   : > { %2340 = vmatprep.subr.bf16.mxu1 %v2239_v51  ;;  %v2221_v59 = vmax.f32 %v2132_v23, 0.0  ;;  %v2236_v4 = vpack.c.bf16 %v2220_v21, %v2216_v55 }
 0x4de   : > { %v2136_v5 = vpop.f32.mrf.mxu0 }
 0x4df   : > { %v2224_v13 = vmax.f32 %v2136_v5, 0.0  ;;  %v2237_v48 = vpack.c.bf16 %v2221_v59, %v2217_v25 }
 0x4e0   : > { %v2138_v24 = vpop.f32.mrf.mxu0  ;;  %2341 = vmatpush1.bf16.msra.mxu1 %v2238_v63 }
 0x4e1   : > { %2342 = vmatprep.subr.bf16.mxu1 %v2235_v18  ;;  %v2225_v7 = vmax.f32 %v2138_v24, 0.0 }
 0x4e2   : > { %v2140_v34 = vpop.f32.mrf.mxu0 }
 0x4e3   : > { %v2228_v60 = vmax.f32 %v2140_v34, 0.0 }
 0x4e4   : > { %v2142_v41 = vpop.f32.mrf.mxu0  ;;  %2343 = vmatpush1.bf16.msra.mxu1 %v2234_v53 }
 0x4e5   : > { %v2229_v57 = vmax.f32 %v2142_v41, 0.0  ;;  %v2240_v40 = vpack.c.bf16 %v2228_v60, %v2224_v13 }
 0x4e7   : > { %v2241_v11 = vpack.c.bf16 %v2229_v57, %v2225_v7  ;;  %3177 = vmatmul.mubr.msk.bf16.vlgmr.msra.gmra.mxu1 %vm1494_vm2, %v3325_v6 }
 0x4e8   : > { %2368 = vmatprep.mubr.bf16.mxu1 %v3438_v8 }
 0x4e9   : > { %2285 = vmatprep.subr.bf16.mxu0 %v2241_v11 }
 0x4ea   : > { %2286 = vmatpush1.bf16.msra.mxu0 %v2240_v40 }
 0x4eb   : > { %2287 = vmatprep.subr.bf16.mxu0 %v2237_v48 }
 0x4ee   : > { %2288 = vmatpush1.bf16.msra.mxu0 %v2236_v4 }
 0x4ef   : > { %2289 = vmatprep.subr.bf16.mxu0 %v2233_v26  ;;  %3178 = vmatmul.mubr.msk.bf16.gmra.mxu1 %vm1494_vm2, %v3326_v0 }
 0x4f0   : > { %2374 = vmatprep.mubr.bf16.mxu1 %v3438_v8 }
 0x4f2   : > { %2290 = vmatpush1.bf16.msra.mxu0 %v2232_v31 }
 0x4f5   : > { %3174 = vmatmul.mubr.msk.bf16.vlgmr.msra.gmra.mxu0 %vm1494_vm2, %v3325_v6 }
 0x4f6   : > { %2315 = vmatprep.mubr.bf16.mxu0 %v3438_v8 }
 0x4f7   : > { %3179 = vmatmul.mubr.msk.bf16.gmra.mxu1 %vm1494_vm2, %v3327_v46 }
 0x4fd   : > { %3175 = vmatmul.mubr.msk.bf16.gmra.mxu0 %vm1494_vm2, %v3326_v0 }
 0x4fe   : > { %2321 = vmatprep.mubr.bf16.mxu0 %v3438_v8 }
 0x505   : > { %3176 = vmatmul.mubr.msk.bf16.gmra.mxu0 %vm1494_vm2, %v3327_v46 }
 0x5a7   : > { %v2362_v47 = vpop.f32.mrf.mxu1 }
 0x5a9   : > { %v2364_v17 = vpop.f32.mrf.mxu1 }
 0x5ab   : > { %v2366_v16 = vpop.f32.mrf.mxu1 }
 0x5ad   : > { %v2367_v27 = vpop.f32.mrf.mxu1 }
 0x5af   : > { %v2370_v39 = vpop.f32.mrf.mxu1 }
 0x5b1   : > { %v2371_v62 = vpop.f32.mrf.mxu1 }
 0x5b3   : > { %v2372_v15 = vpop.f32.mrf.mxu1 }
 0x5b5   : > { %v2309_v37 = vpop.f32.mrf.mxu0  ;;  %v2373_v28 = vpop.f32.mrf.mxu1 }
 0x5b6   : > { %2381 = vxpose.xlu0.b32.start.end [1/1] (short) %v2309_v37, 128 }
 0x5b7   : > { %v2311_v38 = vpop.f32.mrf.mxu0  ;;  %v2376_v3 = vpop.f32.mrf.mxu1 }
 0x5b8   : > { %2413 = vxpose.xlu1.b32.start.end [1/1] (short) %v2311_v38, 128 }
 0x5b9   : > { %v2313_v45 = vpop.f32.mrf.mxu0  ;;  %v2377_v19 = vpop.f32.mrf.mxu1 }
 0x5bb   : > { %v2314_v42 = vpop.f32.mrf.mxu0  ;;  %v2378_v22 = vpop.f32.mrf.mxu1 }
 0x5bd   : > { %v2317_v8 = vpop.f32.mrf.mxu0  ;;  %v2379_v10 = vpop.f32.mrf.mxu1 }
 0x5bf   : > { %v2318_v43 = vpop.f32.mrf.mxu0 }
 0x5c1   : > { %v2319_v58 = vpop.f32.mrf.mxu0 }
 0x5c3   : > { %v2320_v2 = vpop.f32.mrf.mxu0 }
 0x5c5   : > { %v2323_v54 = vpop.f32.mrf.mxu0 }
 0x5c7   : > { %v2324_v61 = vpop.f32.mrf.mxu0 }
 0x5c9   : > { %v2325_v14 = vpop.f32.mrf.mxu0 }
 0x5cb   : > { %v2326_v12 = vpop.f32.mrf.mxu0 }
 0x5f3   : > { %2445 = vxpose.xlu0.b32.start.end [1/1] (short) %v2362_v47, 128 }
 0x5f5   : > { %2477 = vxpose.xlu1.b32.start.end [1/1] (short) %v2364_v17, 128 }
 0x632   : > { %v2397_v30 = vpop.trf.xlu0 }
 0x633   : > { %2510 = vst.msk [vmem:[%s4274_s14] sm:$0xff] %vm2509_vm13, %v2397_v30 }
 0x634   : > { %v2429_v49 = vpop.trf.xlu1 }
 0x635   : > { %2526 = vst.msk [vmem:[%s4274_s14 + $0x80] sm:$0xff] %vm2509_vm13, %v2429_v49 }
 0x636   : > { %v2398_v20 = vpop.trf.xlu0 }
 0x637   : > { %2511 = vst.msk [vmem:[%s4274_s14 + $0x8] sm:$0xff] %vm2509_vm13, %v2398_v20 }
 0x638   : > { %v2430_v29 = vpop.trf.xlu1 }
 0x639   : > { %2527 = vst.msk [vmem:[%s4274_s14 + $0x88] sm:$0xff] %vm2509_vm13, %v2430_v29 }
 0x63a   : > { %v2399_v50 = vpop.trf.xlu0 }
 0x63b   : > { %2512 = vst.msk [vmem:[%s4274_s14 + $0x10] sm:$0xff] %vm2509_vm13, %v2399_v50 }
 0x63c   : > { %v2431_v32 = vpop.trf.xlu1 }
 0x63d   : > { %2528 = vst.msk [vmem:[%s4274_s14 + $0x90] sm:$0xff] %vm2509_vm13, %v2431_v32 }
 0x63e   : > { %v2400_v51 = vpop.trf.xlu0 }
 0x63f   : > { %2513 = vst.msk [vmem:[%s4274_s14 + $0x18] sm:$0xff] %vm2509_vm13, %v2400_v51 }
 0x640   : > { %v2432_v9 = vpop.trf.xlu1 }
 0x641   : > { %2529 = vst.msk [vmem:[%s4274_s14 + $0x98] sm:$0xff] %vm2509_vm13, %v2432_v9 }
 0x642   : > { %v2401_v1 = vpop.trf.xlu0 }
 0x643   : > { %2514 = vst.msk [vmem:[%s4274_s14 + $0x20] sm:$0xff] %vm2509_vm13, %v2401_v1 }
 0x644   : > { %v2433_v23 = vpop.trf.xlu1 }
 0x645   : > { %2530 = vst.msk [vmem:[%s4274_s14 + $0xa0] sm:$0xff] %vm2509_vm13, %v2433_v23 }
 0x646   : > { %v2402_v44 = vpop.trf.xlu0 }
 0x647   : > { %2515 = vst.msk [vmem:[%s4274_s14 + $0x28] sm:$0xff] %vm2509_vm13, %v2402_v44 }
 0x648   : > { %v2434_v52 = vpop.trf.xlu1 }
 0x649   : > { %2531 = vst.msk [vmem:[%s4274_s14 + $0xa8] sm:$0xff] %vm2509_vm13, %v2434_v52 }
 0x64a   : > { %v2403_v63 = vpop.trf.xlu0 }
 0x64b   : > { %2516 = vst.msk [vmem:[%s4274_s14 + $0x30] sm:$0xff] %vm2509_vm13, %v2403_v63 }
 0x64c   : > { %v2435_v18 = vpop.trf.xlu1 }
 0x64d   : > { %2532 = vst.msk [vmem:[%s4274_s14 + $0xb0] sm:$0xff] %vm2509_vm13, %v2435_v18 }
 0x64e   : > { %v2404_v5 = vpop.trf.xlu0 }
 0x64f   : > { %2517 = vst.msk [vmem:[%s4274_s14 + $0x38] sm:$0xff] %vm2509_vm13, %v2404_v5 }
 0x650   : > { %v2436_v24 = vpop.trf.xlu1 }
 0x651   : > { %2533 = vst.msk [vmem:[%s4274_s14 + $0xb8] sm:$0xff] %vm2509_vm13, %v2436_v24 }
 0x652   : > { %v2405_v53 = vpop.trf.xlu0 }
 0x653   : > { %2518 = vst.msk [vmem:[%s4274_s14 + $0x40] sm:$0xff] %vm2509_vm13, %v2405_v53 }
 0x654   : > { %v2437_v34 = vpop.trf.xlu1 }
 0x655   : > { %2534 = vst.msk [vmem:[%s4274_s14 + $0xc0] sm:$0xff] %vm2509_vm13, %v2437_v34 }
 0x656   : > { %v2406_v60 = vpop.trf.xlu0 }
 0x657   : > { %2519 = vst.msk [vmem:[%s4274_s14 + $0x48] sm:$0xff] %vm2509_vm13, %v2406_v60 }
 0x658   : > { %v2438_v41 = vpop.trf.xlu1 }
 0x659   : > { %2535 = vst.msk [vmem:[%s4274_s14 + $0xc8] sm:$0xff] %vm2509_vm13, %v2438_v41 }
 0x65a   : > { %v2407_v59 = vpop.trf.xlu0 }
 0x65b   : > { %2520 = vst.msk [vmem:[%s4274_s14 + $0x50] sm:$0xff] %vm2509_vm13, %v2407_v59 }
 0x65c   : > { %v2439_v7 = vpop.trf.xlu1 }
 0x65d   : > { %2536 = vst.msk [vmem:[%s4274_s14 + $0xd0] sm:$0xff] %vm2509_vm13, %v2439_v7 }
 0x65e   : > { %v2408_v57 = vpop.trf.xlu0 }
 0x65f   : > { %2521 = vst.msk [vmem:[%s4274_s14 + $0x58] sm:$0xff] %vm2509_vm13, %v2408_v57 }
 0x660   : > { %v2440_v6 = vpop.trf.xlu1 }
 0x661   : > { %2537 = vst.msk [vmem:[%s4274_s14 + $0xd8] sm:$0xff] %vm2509_vm13, %v2440_v6 }
 0x662   : > { %v2409_v13 = vpop.trf.xlu0 }
 0x663   : > { %2522 = vst.msk [vmem:[%s4274_s14 + $0x60] sm:$0xff] %vm2509_vm13, %v2409_v13 }
 0x664   : > { %v2441_v25 = vpop.trf.xlu1 }
 0x665   : > { %2538 = vst.msk [vmem:[%s4274_s14 + $0xe0] sm:$0xff] %vm2509_vm13, %v2441_v25 }
 0x666   : > { %v2410_v11 = vpop.trf.xlu0 }
 0x667   : > { %2523 = vst.msk [vmem:[%s4274_s14 + $0x68] sm:$0xff] %vm2509_vm13, %v2410_v11 }
 0x668   : > { %v2442_v21 = vpop.trf.xlu1 }
 0x669   : > { %2539 = vst.msk [vmem:[%s4274_s14 + $0xe8] sm:$0xff] %vm2509_vm13, %v2442_v21 }
 0x66a   : > { %v2411_v40 = vpop.trf.xlu0 }
 0x66b   : > { %2524 = vst.msk [vmem:[%s4274_s14 + $0x70] sm:$0xff] %vm2509_vm13, %v2411_v40 }
 0x66c   : > { %v2443_v56 = vpop.trf.xlu1 }
 0x66d   : > { %2540 = vst.msk [vmem:[%s4274_s14 + $0xf0] sm:$0xff] %vm2509_vm13, %v2443_v56 }
 0x66e   : > { %v2412_v48 = vpop.trf.xlu0 }
 0x66f   : > { %2525 = vst.msk [vmem:[%s4274_s14 + $0x78] sm:$0xff] %vm2509_vm13, %v2412_v48 }
 0x670   : > { %v2444_v55 = vpop.trf.xlu1 }
 0x671   : > { %2541 = vst.msk [vmem:[%s4274_s14 + $0xf8] sm:$0xff] %vm2509_vm13, %v2444_v55 }
 0x672   : > { %v2461_v33 = vpop.trf.xlu0 }
 0x673   : > { %2542 = vst.msk [vmem:[%s4274_s14 + $0x100] sm:$0xff] %vm2509_vm13, %v2461_v33 }
 0x674   : > { %v2493_v35 = vpop.trf.xlu1 }
 0x675   : > { %2558 = vst.msk [vmem:[%s4274_s14 + $0x180] sm:$0xff] %vm2509_vm13, %v2493_v35 }
 0x676   : > { %v2462_v4 = vpop.trf.xlu0 }
 0x677   : > { %2543 = vst.msk [vmem:[%s4274_s14 + $0x108] sm:$0xff] %vm2509_vm13, %v2462_v4 }
 0x678   : > { %v2494_v26 = vpop.trf.xlu1 }
 0x679   : > { %2559 = vst.msk [vmem:[%s4274_s14 + $0x188] sm:$0xff] %vm2509_vm13, %v2494_v26 }
 0x67a   : > { %v2463_v36 = vpop.trf.xlu0 }
 0x67b   : > { %2544 = vst.msk [vmem:[%s4274_s14 + $0x110] sm:$0xff] %vm2509_vm13, %v2463_v36 }
 0x67c   : > { %v2495_v31 = vpop.trf.xlu1 }
 0x67d   : > { %2560 = vst.msk [vmem:[%s4274_s14 + $0x190] sm:$0xff] %vm2509_vm13, %v2495_v31 }
 0x67e   : > { %v2464_v0 = vpop.trf.xlu0 }
 0x67f   : > { %2545 = vst.msk [vmem:[%s4274_s14 + $0x118] sm:$0xff] %vm2509_vm13, %v2464_v0 }
 0x680   : > { %v2496_v46 = vpop.trf.xlu1 }
 0x681   : > { %2561 = vst.msk [vmem:[%s4274_s14 + $0x198] sm:$0xff] %vm2509_vm13, %v2496_v46 }
 0x682   : > { %v2465_v47 = vpop.trf.xlu0 }
 0x683   : > { %2546 = vst.msk [vmem:[%s4274_s14 + $0x120] sm:$0xff] %vm2509_vm13, %v2465_v47 }
 0x684   : > { %v2497_v17 = vpop.trf.xlu1 }
 0x685   : > { %2562 = vst.msk [vmem:[%s4274_s14 + $0x1a0] sm:$0xff] %vm2509_vm13, %v2497_v17 }
 0x686   : > { %v2466_v16 = vpop.trf.xlu0 }
 0x687   : > { %2547 = vst.msk [vmem:[%s4274_s14 + $0x128] sm:$0xff] %vm2509_vm13, %v2466_v16 }
 0x688   : > { %v2498_v27 = vpop.trf.xlu1 }
 0x689   : > { %2563 = vst.msk [vmem:[%s4274_s14 + $0x1a8] sm:$0xff] %vm2509_vm13, %v2498_v27 }
 0x68a   : > { %v2467_v37 = vpop.trf.xlu0 }
 0x68b   : > { %2548 = vst.msk [vmem:[%s4274_s14 + $0x130] sm:$0xff] %vm2509_vm13, %v2467_v37 }
 0x68c   : > { %v2499_v38 = vpop.trf.xlu1 }
 0x68d   : > { %2564 = vst.msk [vmem:[%s4274_s14 + $0x1b0] sm:$0xff] %vm2509_vm13, %v2499_v38 }
 0x68e   : > { %v2468_v45 = vpop.trf.xlu0 }
 0x68f   : > { %2549 = vst.msk [vmem:[%s4274_s14 + $0x138] sm:$0xff] %vm2509_vm13, %v2468_v45 }
 0x690   : > { %v2500_v42 = vpop.trf.xlu1 }
 0x691   : > { %2565 = vst.msk [vmem:[%s4274_s14 + $0x1b8] sm:$0xff] %vm2509_vm13, %v2500_v42 }
 0x692   : > { %v2469_v8 = vpop.trf.xlu0 }
 0x693   : > { %2550 = vst.msk [vmem:[%s4274_s14 + $0x140] sm:$0xff] %vm2509_vm13, %v2469_v8 }
 0x694   : > { %v2501_v39 = vpop.trf.xlu1 }
 0x695   : > { %2566 = vst.msk [vmem:[%s4274_s14 + $0x1c0] sm:$0xff] %vm2509_vm13, %v2501_v39 }
 0x696   : > { %v2470_v43 = vpop.trf.xlu0 }
 0x697   : > { %2551 = vst.msk [vmem:[%s4274_s14 + $0x148] sm:$0xff] %vm2509_vm13, %v2470_v43 }
 0x698   : > { %v2502_v62 = vpop.trf.xlu1 }
 0x699   : > { %2567 = vst.msk [vmem:[%s4274_s14 + $0x1c8] sm:$0xff] %vm2509_vm13, %v2502_v62 }
 0x69a   : > { %v2471_v58 = vpop.trf.xlu0 }
 0x69b   : > { %2552 = vst.msk [vmem:[%s4274_s14 + $0x150] sm:$0xff] %vm2509_vm13, %v2471_v58 }
 0x69c   : > { %v2503_v15 = vpop.trf.xlu1 }
 0x69d   : > { %2568 = vst.msk [vmem:[%s4274_s14 + $0x1d0] sm:$0xff] %vm2509_vm13, %v2503_v15 }
 0x69e   : > { %v2472_v2 = vpop.trf.xlu0 }
 0x69f   : > { %2553 = vst.msk [vmem:[%s4274_s14 + $0x158] sm:$0xff] %vm2509_vm13, %v2472_v2 }
 0x6a0   : > { %v2504_v28 = vpop.trf.xlu1 }
 0x6a1   : > { %2569 = vst.msk [vmem:[%s4274_s14 + $0x1d8] sm:$0xff] %vm2509_vm13, %v2504_v28 }
 0x6a2   : > { %v2473_v54 = vpop.trf.xlu0 }
 0x6a3   : > { %2554 = vst.msk [vmem:[%s4274_s14 + $0x160] sm:$0xff] %vm2509_vm13, %v2473_v54 }
 0x6a4   : > { %v2505_v3 = vpop.trf.xlu1 }
 0x6a5   : > { %2570 = vst.msk [vmem:[%s4274_s14 + $0x1e0] sm:$0xff] %vm2509_vm13, %v2505_v3 }
 0x6a6   : > { %v2474_v61 = vpop.trf.xlu0 }
 0x6a7   : > { %2555 = vst.msk [vmem:[%s4274_s14 + $0x168] sm:$0xff] %vm2509_vm13, %v2474_v61 }
 0x6a8   : > { %v2506_v19 = vpop.trf.xlu1 }
 0x6a9   : > { %2571 = vst.msk [vmem:[%s4274_s14 + $0x1e8] sm:$0xff] %vm2509_vm13, %v2506_v19 }
 0x6aa   : > { %v2475_v14 = vpop.trf.xlu0 }
 0x6ab   : > { %2556 = vst.msk [vmem:[%s4274_s14 + $0x170] sm:$0xff] %vm2509_vm13, %v2475_v14 }
 0x6ac   : > { %v2507_v22 = vpop.trf.xlu1 }
 0x6ad   : > { %2572 = vst.msk [vmem:[%s4274_s14 + $0x1f0] sm:$0xff] %vm2509_vm13, %v2507_v22  ;;  %2580 = sbr.rel (!%p3486_p4) target bundleno = 1778 (0x6f2), region = 36 }
 0x6ae   : > { %v2476_v12 = vpop.trf.xlu0 }
 0x6af   : > { %2557 = vst.msk [vmem:[%s4274_s14 + $0x178] sm:$0xff] %vm2509_vm13, %v2476_v12 }
 0x6b0   : > { %v2508_v10 = vpop.trf.xlu1 }
 0x6b1   : > { %2573 = vst.msk [vmem:[%s4274_s14 + $0x1f8] sm:$0xff] %vm2509_vm13, %v2508_v10 }
 0x6b2   : > { %s4632_s12 = smov (!%p2583_p8, %s2582_s12), 64 }
 0x6b3   : > { %s3182_s24 = sshll.u32 %s4632_s12, 7 }
 0x6b4   : > { %p3185_p9 = scmp.eq.s32.totalorder %s3182_s24, 0 }
 0x6b5   : > { %s4417_s25 = sshrl.u32 (!%p3185_p9), %s4632_s12, 6 }
 0x6b6   : > { %2591 = sbr.rel (%p3185_p9) target bundleno = 1778 (0x6f2), region = 40  ;;  %p3186_p10 = scmp.le.s32.totalorder (!%p3185_p9), %s4417_s25, 0 }
 0x6bb   : > { %2998 = sbr.rel (%p3186_p10) target bundleno = 1761 (0x6e1), region = 119  ;;  %s4623_s15 = smov (!%p3186_p10), %s4411_s23 }
 0x6bc   : > { %s4624_s20 = smov (!%p3186_p10), %s4274_s14  ;;  %s4426_s21 = smov (!%p3186_p10), 0  }
 0x6bd   : > { %s4428_s26 = smov (!%p3186_p10), 0  }
 0x6c0 LB: >> { %v2780_v30 = vld [vmem:[%s3406_s20] sm:$0xff]  ;;  %v2782_v49 = vld [vmem:[%s3406_s20 + $0x8] sm:$0xff]  ;;  %v2784_v20 = vld [vmem:[%s3406_s20 + $0x10] sm:$0xff]  ;;  %s2908_s27 = sadd.s32 1, %s3410_s21  ;;  %s2774_s26 = sadd.s32 1, %s3414_s26   ;;  %s3414_s26 = sphi %s4428_s26, %s2774_s26   ;;  %s3410_s21 = sphi %s4426_s21, %s4627_s21   ;;  %s3406_s20 = sphi %s4624_s20, %s4626_s20   ;;  %s3402_s15 = sphi %s4623_s15, %s4625_s15  }
 0x6c1   : >> { %2781 = vst [vmem:[%s3402_s15] sm:$0xff] %v2780_v30  ;;  %2783 = vst [vmem:[%s3402_s15 + $0x8] sm:$0xff] %v2782_v49  ;;  %v2786_v29 = vld [vmem:[%s3406_s20 + $0x18] sm:$0xff]  ;;  %v2788_v50 = vld [vmem:[%s3406_s20 + $0x20] sm:$0xff]  ;;  %p2909_p11 = scmp.ge.s32.totalorder %s2908_s27, %s4417_s25  ;;  %p2773_p12 = scmp.ge.s32.totalorder %s2774_s26, %s4417_s25 }
 0x6c2   : >> { %2785 = vst [vmem:[%s3402_s15 + $0x10] sm:$0xff] %v2784_v20  ;;  %v2790_v32 = vld [vmem:[%s3406_s20 + $0x28] sm:$0xff]  ;;  %2787 = vst [vmem:[%s3402_s15 + $0x18] sm:$0xff] %v2786_v29  ;;  %v2792_v51 = vld [vmem:[%s3406_s20 + $0x30] sm:$0xff] }
 0x6c3   : >> { %2789 = vst [vmem:[%s3402_s15 + $0x20] sm:$0xff] %v2788_v50  ;;  %2791 = vst [vmem:[%s3402_s15 + $0x28] sm:$0xff] %v2790_v32  ;;  %v2794_v9 = vld [vmem:[%s3406_s20 + $0x38] sm:$0xff]  ;;  %v2796_v1 = vld [vmem:[%s3406_s20 + $0x40] sm:$0xff]  ;;  %s4634_s27 = smov (%p2909_p11, %s2908_s27), 0 }
 0x6c4   : >> { %2793 = vst [vmem:[%s3402_s15 + $0x30] sm:$0xff] %v2792_v51  ;;  %2795 = vst [vmem:[%s3402_s15 + $0x38] sm:$0xff] %v2794_v9  ;;  %v2798_v23 = vld [vmem:[%s3406_s20 + $0x48] sm:$0xff]  ;;  %v2800_v44 = vld [vmem:[%s3406_s20 + $0x50] sm:$0xff]  ;;  %s3187_s28 = sshll.u32 %s4634_s27, 9  ;;  %s4627_s21 = smov %s4634_s27 }
 0x6c5   : >> { %2797 = vst [vmem:[%s3402_s15 + $0x40] sm:$0xff] %v2796_v1  ;;  %v2802_v52 = vld [vmem:[%s3406_s20 + $0x58] sm:$0xff]  ;;  %2799 = vst [vmem:[%s3402_s15 + $0x48] sm:$0xff] %v2798_v23  ;;  %v2804_v63 = vld [vmem:[%s3406_s20 + $0x60] sm:$0xff]  ;;  %s4484_s29 = scalar_lea.vmem %s4274_s14, %s3187_s28 [#allocation2]   ;;  %s4487_s30 = scalar_lea.vmem %s4411_s23, %s3187_s28  }
 0x6c6   : >> { %2801 = vst [vmem:[%s3402_s15 + $0x50] sm:$0xff] %v2800_v44  ;;  %2803 = vst [vmem:[%s3402_s15 + $0x58] sm:$0xff] %v2802_v52  ;;  %v2806_v18 = vld [vmem:[%s3406_s20 + $0x68] sm:$0xff]  ;;  %v2808_v5 = vld [vmem:[%s3406_s20 + $0x70] sm:$0xff] }
 0x6c7   : >> { %2805 = vst [vmem:[%s3402_s15 + $0x60] sm:$0xff] %v2804_v63  ;;  %2807 = vst [vmem:[%s3402_s15 + $0x68] sm:$0xff] %v2806_v18  ;;  %v2810_v24 = vld [vmem:[%s3406_s20 + $0x78] sm:$0xff]  ;;  %v2812_v53 = vld [vmem:[%s3406_s20 + $0x80] sm:$0xff] }
 0x6c8   : >> { %2809 = vst [vmem:[%s3402_s15 + $0x70] sm:$0xff] %v2808_v5  ;;  %v2814_v34 = vld [vmem:[%s3406_s20 + $0x88] sm:$0xff]  ;;  %2811 = vst [vmem:[%s3402_s15 + $0x78] sm:$0xff] %v2810_v24  ;;  %v2816_v60 = vld [vmem:[%s3406_s20 + $0x90] sm:$0xff] }
 0x6c9   : >> { %2813 = vst [vmem:[%s3402_s15 + $0x80] sm:$0xff] %v2812_v53  ;;  %2815 = vst [vmem:[%s3402_s15 + $0x88] sm:$0xff] %v2814_v34  ;;  %v2818_v41 = vld [vmem:[%s3406_s20 + $0x98] sm:$0xff]  ;;  %v2820_v59 = vld [vmem:[%s3406_s20 + $0xa0] sm:$0xff] }
 0x6ca   : >> { %2817 = vst [vmem:[%s3402_s15 + $0x90] sm:$0xff] %v2816_v60  ;;  %2819 = vst [vmem:[%s3402_s15 + $0x98] sm:$0xff] %v2818_v41  ;;  %v2822_v7 = vld [vmem:[%s3406_s20 + $0xa8] sm:$0xff]  ;;  %v2824_v57 = vld [vmem:[%s3406_s20 + $0xb0] sm:$0xff] }
 0x6cb   : >> { %2821 = vst [vmem:[%s3402_s15 + $0xa0] sm:$0xff] %v2820_v59  ;;  %v2826_v6 = vld [vmem:[%s3406_s20 + $0xb8] sm:$0xff]  ;;  %2823 = vst [vmem:[%s3402_s15 + $0xa8] sm:$0xff] %v2822_v7  ;;  %v2828_v13 = vld [vmem:[%s3406_s20 + $0xc0] sm:$0xff] }
 0x6cc   : >> { %2825 = vst [vmem:[%s3402_s15 + $0xb0] sm:$0xff] %v2824_v57  ;;  %2827 = vst [vmem:[%s3402_s15 + $0xb8] sm:$0xff] %v2826_v6  ;;  %v2830_v25 = vld [vmem:[%s3406_s20 + $0xc8] sm:$0xff]  ;;  %v2832_v11 = vld [vmem:[%s3406_s20 + $0xd0] sm:$0xff] }
 0x6cd   : >> { %2829 = vst [vmem:[%s3402_s15 + $0xc0] sm:$0xff] %v2828_v13  ;;  %2831 = vst [vmem:[%s3402_s15 + $0xc8] sm:$0xff] %v2830_v25  ;;  %v2834_v21 = vld [vmem:[%s3406_s20 + $0xd8] sm:$0xff]  ;;  %v2836_v40 = vld [vmem:[%s3406_s20 + $0xe0] sm:$0xff] }
 0x6ce   : >> { %2833 = vst [vmem:[%s3402_s15 + $0xd0] sm:$0xff] %v2832_v11  ;;  %v2838_v56 = vld [vmem:[%s3406_s20 + $0xe8] sm:$0xff]  ;;  %2835 = vst [vmem:[%s3402_s15 + $0xd8] sm:$0xff] %v2834_v21  ;;  %v2840_v48 = vld [vmem:[%s3406_s20 + $0xf0] sm:$0xff] }
 0x6cf   : >> { %2837 = vst [vmem:[%s3402_s15 + $0xe0] sm:$0xff] %v2836_v40  ;;  %2839 = vst [vmem:[%s3402_s15 + $0xe8] sm:$0xff] %v2838_v56  ;;  %v2842_v55 = vld [vmem:[%s3406_s20 + $0xf8] sm:$0xff]  ;;  %v2844_v33 = vld [vmem:[%s3406_s20 + $0x100] sm:$0xff] }
 0x6d0   : >> { %2841 = vst [vmem:[%s3402_s15 + $0xf0] sm:$0xff] %v2840_v48  ;;  %2843 = vst [vmem:[%s3402_s15 + $0xf8] sm:$0xff] %v2842_v55  ;;  %v2846_v35 = vld [vmem:[%s3406_s20 + $0x108] sm:$0xff]  ;;  %v2848_v4 = vld [vmem:[%s3406_s20 + $0x110] sm:$0xff] }
 0x6d1   : >> { %2845 = vst [vmem:[%s3402_s15 + $0x100] sm:$0xff] %v2844_v33  ;;  %v2850_v26 = vld [vmem:[%s3406_s20 + $0x118] sm:$0xff]  ;;  %2847 = vst [vmem:[%s3402_s15 + $0x108] sm:$0xff] %v2846_v35  ;;  %v2852_v36 = vld [vmem:[%s3406_s20 + $0x120] sm:$0xff] }
 0x6d2   : >> { %2849 = vst [vmem:[%s3402_s15 + $0x110] sm:$0xff] %v2848_v4  ;;  %2851 = vst [vmem:[%s3402_s15 + $0x118] sm:$0xff] %v2850_v26  ;;  %v2854_v31 = vld [vmem:[%s3406_s20 + $0x128] sm:$0xff]  ;;  %v2856_v0 = vld [vmem:[%s3406_s20 + $0x130] sm:$0xff] }
 0x6d3   : >> { %2853 = vst [vmem:[%s3402_s15 + $0x120] sm:$0xff] %v2852_v36  ;;  %2855 = vst [vmem:[%s3402_s15 + $0x128] sm:$0xff] %v2854_v31  ;;  %v2858_v46 = vld [vmem:[%s3406_s20 + $0x138] sm:$0xff]  ;;  %v2860_v47 = vld [vmem:[%s3406_s20 + $0x140] sm:$0xff] }
 0x6d4   : >> { %2857 = vst [vmem:[%s3402_s15 + $0x130] sm:$0xff] %v2856_v0  ;;  %v2862_v17 = vld [vmem:[%s3406_s20 + $0x148] sm:$0xff]  ;;  %2859 = vst [vmem:[%s3402_s15 + $0x138] sm:$0xff] %v2858_v46  ;;  %v2864_v16 = vld [vmem:[%s3406_s20 + $0x150] sm:$0xff] }
 0x6d5   : >> { %2861 = vst [vmem:[%s3402_s15 + $0x140] sm:$0xff] %v2860_v47  ;;  %2863 = vst [vmem:[%s3402_s15 + $0x148] sm:$0xff] %v2862_v17  ;;  %v2866_v27 = vld [vmem:[%s3406_s20 + $0x158] sm:$0xff]  ;;  %v2868_v37 = vld [vmem:[%s3406_s20 + $0x160] sm:$0xff] }
 0x6d6   : >> { %2865 = vst [vmem:[%s3402_s15 + $0x150] sm:$0xff] %v2864_v16  ;;  %2867 = vst [vmem:[%s3402_s15 + $0x158] sm:$0xff] %v2866_v27  ;;  %v2870_v38 = vld [vmem:[%s3406_s20 + $0x168] sm:$0xff]  ;;  %v2872_v45 = vld [vmem:[%s3406_s20 + $0x170] sm:$0xff] }
 0x6d7   : >> { %2869 = vst [vmem:[%s3402_s15 + $0x160] sm:$0xff] %v2868_v37  ;;  %v2874_v42 = vld [vmem:[%s3406_s20 + $0x178] sm:$0xff]  ;;  %2871 = vst [vmem:[%s3402_s15 + $0x168] sm:$0xff] %v2870_v38  ;;  %v2876_v8 = vld [vmem:[%s3406_s20 + $0x180] sm:$0xff] }
 0x6d8   : >> { %2873 = vst [vmem:[%s3402_s15 + $0x170] sm:$0xff] %v2872_v45  ;;  %2875 = vst [vmem:[%s3402_s15 + $0x178] sm:$0xff] %v2874_v42  ;;  %v2878_v39 = vld [vmem:[%s3406_s20 + $0x188] sm:$0xff]  ;;  %v2880_v43 = vld [vmem:[%s3406_s20 + $0x190] sm:$0xff] }
 0x6d9   : >> { %2877 = vst [vmem:[%s3402_s15 + $0x180] sm:$0xff] %v2876_v8  ;;  %2879 = vst [vmem:[%s3402_s15 + $0x188] sm:$0xff] %v2878_v39  ;;  %v2882_v62 = vld [vmem:[%s3406_s20 + $0x198] sm:$0xff]  ;;  %v2884_v58 = vld [vmem:[%s3406_s20 + $0x1a0] sm:$0xff] }
 0x6da   : >> { %2881 = vst [vmem:[%s3402_s15 + $0x190] sm:$0xff] %v2880_v43  ;;  %v2886_v15 = vld [vmem:[%s3406_s20 + $0x1a8] sm:$0xff]  ;;  %2883 = vst [vmem:[%s3402_s15 + $0x198] sm:$0xff] %v2882_v62  ;;  %v2888_v2 = vld [vmem:[%s3406_s20 + $0x1b0] sm:$0xff] }
 0x6db   : >> { %2885 = vst [vmem:[%s3402_s15 + $0x1a0] sm:$0xff] %v2884_v58  ;;  %2887 = vst [vmem:[%s3402_s15 + $0x1a8] sm:$0xff] %v2886_v15  ;;  %v2890_v28 = vld [vmem:[%s3406_s20 + $0x1b8] sm:$0xff]  ;;  %v2892_v54 = vld [vmem:[%s3406_s20 + $0x1c0] sm:$0xff] }
 0x6dc   : >> { %2889 = vst [vmem:[%s3402_s15 + $0x1b0] sm:$0xff] %v2888_v2  ;;  %2891 = vst [vmem:[%s3402_s15 + $0x1b8] sm:$0xff] %v2890_v28  ;;  %v2894_v3 = vld [vmem:[%s3406_s20 + $0x1c8] sm:$0xff]  ;;  %v2896_v61 = vld [vmem:[%s3406_s20 + $0x1d0] sm:$0xff]  ;;  %2776 = sbr.rel (!%p2773_p12) target bundleno = 1728 (0x6c0), region = 125 }
 0x6dd   : >> { %2893 = vst [vmem:[%s3402_s15 + $0x1c0] sm:$0xff] %v2892_v54  ;;  %v2898_v19 = vld [vmem:[%s3406_s20 + $0x1d8] sm:$0xff]  ;;  %2895 = vst [vmem:[%s3402_s15 + $0x1c8] sm:$0xff] %v2894_v3  ;;  %v2900_v14 = vld [vmem:[%s3406_s20 + $0x1e0] sm:$0xff] }
 0x6de   : >> { %2897 = vst [vmem:[%s3402_s15 + $0x1d0] sm:$0xff] %v2896_v61  ;;  %2899 = vst [vmem:[%s3402_s15 + $0x1d8] sm:$0xff] %v2898_v19  ;;  %v2902_v22 = vld [vmem:[%s3406_s20 + $0x1e8] sm:$0xff]  ;;  %v2904_v12 = vld [vmem:[%s3406_s20 + $0x1f0] sm:$0xff] }
 0x6df   : >> { %2901 = vst [vmem:[%s3402_s15 + $0x1e0] sm:$0xff] %v2900_v14  ;;  %2903 = vst [vmem:[%s3402_s15 + $0x1e8] sm:$0xff] %v2902_v22  ;;  %v2906_v10 = vld [vmem:[%s3406_s20 + $0x1f8] sm:$0xff]  ;;  %s4626_s20 = smov %s4484_s29 }
 0x6e0   : >> { %2905 = vst [vmem:[%s3402_s15 + $0x1f0] sm:$0xff] %v2904_v12  ;;  %2907 = vst [vmem:[%s3402_s15 + $0x1f8] sm:$0xff] %v2906_v10  ;;  %s4625_s15 = smov %s4487_s30 }
 0x6e1 PF: > { %s4592_s4 = sand.u32 63, %s4632_s12   ;;  %s3198_s5 = sshll.u32 %s4417_s25, 9 }
 0x6e2   : > { %s2919_s6 = scalar_lea.vmem %s4274_s14, %s3198_s5 [#allocation2]   ;;  %s2921_s7 = scalar_lea.vmem %s4411_s23, %s3198_s5  }
 0x6e3   : > { %p3192_p13 = scmp.le.s32.totalorder %s4592_s4, 0 }
 0x6e4   : > { %s3416_s8 = smov (!%p3192_p13), %s2921_s7   ;;  %s3420_s9 = smov (!%p3192_p13), %s2919_s6  }
 0x6e5   : > { %3012 = sbr.rel (%p3192_p13) target bundleno = 1778 (0x6f2), region = 130  ;;  %s3424_s10 = smov (!%p3192_p13), 0  }
 0x6e6   : > { %s3428_s11 = smov (!%p3192_p13), 0  }
 0x6ea LB: >> { %v2931_v30 = vld [vmem:[%s3422_s9] sm:$0xff]  ;;  %s2933_s12 = sadd.s32 1, %s3426_s10  ;;  %s2925_s11 = sadd.s32 1, %s3430_s11   ;;  %s3430_s11 = sphi %s3428_s11, %s2925_s11   ;;  %s3426_s10 = sphi %s3424_s10, %s3425_s10   ;;  %s3422_s9 = sphi %s3420_s9, %s2938_s9   ;;  %s3418_s8 = sphi %s3416_s8, %s2939_s8  }
 0x6eb   : >> { %2932 = vst [vmem:[%s3418_s8] sm:$0xff] %v2931_v30  ;;  %p2934_p0 = scmp.ge.s32.totalorder %s2933_s12, %s4592_s4  ;;  %p2924_p1 = scmp.ge.s32.totalorder %s2925_s11, %s4592_s4 }
 0x6ed   : >> { %s4636_s12 = smov (%p2934_p0, %s2933_s12), 0  ;;  %2927 = sbr.rel (!%p2924_p1) target bundleno = 1770 (0x6ea), region = 136 }
 0x6ee   : >> { %s3193_s14 = sshll.u32 %s4636_s12, 3  ;;  %s3425_s10 = smov %s4636_s12  }
 0x6ef   : >> { %s2938_s9 = scalar_lea.vmem %s2919_s6, %s3193_s14 [#allocation2]   ;;  %s2939_s8 = scalar_lea.vmem %s2921_s7, %s3193_s14  }
 0x6f2 PF: > { %p10_p2 = scmp.ge.s32.totalorder %s3476_s16, 4   ;;  %s4628_s12 = smov %s3394_s13 }
 0x6f3   : > { %s4629_s13 = smov %s3484_s19  ;;  %s4630_s14 = smov %s3476_s16 }
 0x6f4   :  { %12 = sbr.rel (!%p10_p2) target bundleno = 2 (0x2), region = 147 }

</bundles_post_ra>
